<compile_context>
chip_gen: v5e
topology: v5e:2x2
jax: 0.10.0
libtpu: 0.0.40
codegen_flags: <defaults>
</compile_context>

<pallas_src>
import jax
import jax.numpy as jnp
from jax.experimental import pallas as pl
from jax.experimental.pallas import tpu as pltpu

B = 2            # batch
C_X = 2048       # ResNet50 backbone channels
C_RCNN = 512     # Decoder LSTM hidden size
C_FACE = 512     # ResNet18 feature size
H = W = 14       # GAvgPool kernel_size=14 implies a 14x14 spatial map
S_SPATIAL = H * W                    # 196
C_FEAT = C_X + C_RCNN + C_FACE       # 3072 = classifier8 in_features
N_EMO = 8                            # classifier8 out_features
LANES = 128                          # lane-dense output slab width


def fusion_head_kernel(x1_ref, wx_ref, base_ref, emotion_ref):
    # GAvgPool folded into classifier8's x-slice (1/S pre-folded into Wx):
    #   t[k, s] = sum_c (Wx[k, c] / S) * x1[c, s]    (MXU: M=8, K=2048, N=196)
    t = jnp.dot(wx_ref[...], x1_ref[0], preferred_element_type=jnp.float32)

    # x-contribution per class (lane reduce) + precomputed bias/rcnn/face
    # base logits -> (8, 1) column.
    logits = base_ref[0] + jnp.sum(t, axis=1, keepdims=True)

    # Softmax over the 8 emotion classes (sublane axis).
    m = jnp.max(logits, axis=0, keepdims=True)
    e = jnp.exp(logits - m)
    emotion = e / jnp.sum(e, axis=0, keepdims=True)                 # (8, 1)

    # Lane-dense store: broadcast the column across 128 lanes (unmasked vst);
    # the wrapper slices lane 0.
    emotion_ref[0] = jnp.broadcast_to(emotion, emotion_ref.shape[1:])


def model_resnet_head(x1_feat, rcnn_feat, face_feat, w8, b8):
    """x1_feat: (B, 2048, 14, 14) NCHW; rcnn_feat/face_feat: (B, 512);
    w8: (8, 3072) torch Linear layout; b8: (8,). Returns (emotion, sentiment)."""
    b, c_x = x1_feat.shape[0], x1_feat.shape[1]
    s = x1_feat.shape[2] * x1_feat.shape[3]
    c_rcnn = rcnn_feat.shape[1]
    n_emo = w8.shape[0]

    # Keep NCHW flattening: channels on sublanes, spatial on lanes (no wrapper
    # transpose of the 3 MiB feature map; the MXU contraction makes the
    # 196->256 lane padding VMEM-only).
    x1_flat = x1_feat.reshape(b, c_x, s)                 # (B, 2048, 196)

    # classifier8 weight split per feature source; GAvgPool's 1/S folded in.
    wx = w8[:, :c_x] * (1.0 / s)                         # (8, 2048), natural layout
    wr = w8[:, c_x:c_x + c_rcnn]                         # (8, 512)
    wf = w8[:, c_x + c_rcnn:]                            # (8, 512)

    # Tiny (~16 KFLOP) rcnn/face/bias contributions precomputed in XLA and fed
    # to the kernel as a (B, 8, 1) per-batch base-logits column.
    base_logits = b8[None, :] + rcnn_feat @ wr.T + face_feat @ wf.T  # (B, 8)
    base_col = base_logits[:, :, None]                   # (B, 8, 1)

    flops = 2 * b * n_emo * c_x * s
    bytes_accessed = 4 * (b * c_x * s + n_emo * c_x + b * n_emo * (1 + LANES))

    grid_spec = pltpu.PrefetchScalarGridSpec(
        num_scalar_prefetch=0,
        grid=(b,),
        in_specs=[
            pl.BlockSpec((1, c_x, s), lambda bi: (bi, 0, 0)),      # x1 (per batch)
            pl.BlockSpec((n_emo, c_x), lambda bi: (0, 0)),         # Wx (resident)
            pl.BlockSpec((1, n_emo, 1), lambda bi: (bi, 0, 0)),    # base logits
        ],
        out_specs=pl.BlockSpec((1, n_emo, LANES), lambda bi: (bi, 0, 0)),
    )

    emotion_slab = pl.pallas_call(
        fusion_head_kernel,
        out_shape=jax.ShapeDtypeStruct((b, n_emo, LANES), jnp.float32),
        grid_spec=grid_spec,
        compiler_params=pltpu.CompilerParams(
            dimension_semantics=("parallel",)),
        cost_estimate=pl.CostEstimate(flops=int(flops),
                                      transcendentals=int(b * n_emo),
                                      bytes_accessed=int(bytes_accessed)),
    )(x1_flat, wx, base_col)

    emotion = emotion_slab[:, :, 0]                       # (B, 8)
    positive = jnp.sum(emotion[:, :4], axis=1, keepdims=True)
    negative = jnp.sum(emotion[:, 4:], axis=1, keepdims=True)
    sentiment = jnp.concatenate([positive, negative], axis=1)
    return emotion, sentiment


def _reference(x1_feat, rcnn_feat, face_feat, w8, b8):
    x = jnp.mean(x1_feat.reshape(x1_feat.shape[0], x1_feat.shape[1], -1), axis=-1)
    features = jnp.concatenate([x, rcnn_feat, face_feat], axis=1)
    logits = features @ w8.T + b8
    emotion = jax.nn.softmax(logits, axis=1)
    positive = emotion[:, 0:4].sum(axis=1, keepdims=True)
    negative = emotion[:, 4:8].sum(axis=1, keepdims=True)
    return emotion, jnp.concatenate([positive, negative], axis=1)


if __name__ == "__main__":
    key = jax.random.PRNGKey(0)
    k1, k2, k3, k4, k5 = jax.random.split(key, 5)

    # Backbone feature outputs (the external ResNet50 / ResNet18 / LSTM stages).
    x1_feat = jax.random.normal(k1, (B, C_X, H, W), jnp.float32)
    rcnn_feat = jax.random.normal(k2, (B, C_RCNN), jnp.float32)
    face_feat = jax.random.normal(k3, (B, C_FACE), jnp.float32)

    # classifier8 = nn.Linear(3072, 8): deterministic synthetic parameters.
    w8 = jax.random.normal(k4, (N_EMO, C_FEAT), jnp.float32) * 0.02
    b8 = jax.random.normal(k5, (N_EMO,), jnp.float32) * 0.02

    emotion, sentiment = model_resnet_head(x1_feat, rcnn_feat, face_feat, w8, b8)
    jax.block_until_ready((emotion, sentiment))

    emo_ref, sent_ref = _reference(x1_feat, rcnn_feat, face_feat, w8, b8)
    assert emotion.shape == (B, N_EMO) and sentiment.shape == (B, 2)
    # Slightly looser than exact-f32 because the pooling mean is re-associated
    # through the MXU contraction (still full f32 accumulation).
    assert jnp.allclose(emotion, emo_ref, atol=1e-4, rtol=1e-3), \
        float(jnp.max(jnp.abs(emotion - emo_ref)))
    assert jnp.allclose(sentiment, sent_ref, atol=1e-4, rtol=1e-3), \
        float(jnp.max(jnp.abs(sentiment - sent_ref)))

    print("KERNEL_OK")
</pallas_src>

<mosaic_0001>
module attributes {stable_mosaic.version = 11 : i64} {
  func.func @fusion_head_kernel(%arg0: i32, %arg1: memref<1x2048x196xf32, #tpu.memory_space<vmem>>, %arg2: memref<8x2048xf32, #tpu.memory_space<vmem>>, %arg3: memref<1x8x1xf32, #tpu.memory_space<vmem>>, %arg4: memref<1x8x128xf32, #tpu.memory_space<vmem>>) attributes {dimension_semantics = [#tpu.dimension_semantics<parallel>], iteration_bounds = array<i64: 2>, scalar_prefetch = 0 : i64, scratch_operands = 0 : i64, tpu.core_type = #tpu.core_type<tc>, window_params = [{transform_indices = @transform_0, window_bounds = array<i64: 1, 2048, 196>}, {pipeline_mode = #tpu.pipeline_mode<synchronous>, transform_indices = @transform_1, window_bounds = array<i64: 8, 2048>}, {transform_indices = @transform_2, window_bounds = array<i64: 1, 8, 1>}, {transform_indices = @transform_3, window_bounds = array<i64: 1, 8, 128>}]} {
    %c0 = arith.constant 0 : index
    %c0_0 = arith.constant 0 : index
    %0 = vector.load %arg2[%c0, %c0_0] : memref<8x2048xf32, #tpu.memory_space<vmem>>, vector<8x2048xf32>
    %c0_1 = arith.constant 0 : index
    %c0_2 = arith.constant 0 : index
    %c0_3 = arith.constant 0 : index
    %1 = vector.load %arg1[%c0_1, %c0_2, %c0_3] : memref<1x2048x196xf32, #tpu.memory_space<vmem>>, vector<1x2048x196xf32>
    %2 = vector.shape_cast %1 : vector<1x2048x196xf32> to vector<2048x196xf32>
    %cst = arith.constant dense<0.000000e+00> : vector<8x196xf32>
    %3 = tpu.matmul %0, %2, %cst {dimension_numbers = #tpu.dot_dimension_numbers<[1], [0], [0], [1], [0, 0, 1, 1], [], []>} : vector<8x2048xf32>, vector<2048x196xf32>, vector<8x196xf32> -> vector<8x196xf32>
    %c0_4 = arith.constant 0 : index
    %c0_5 = arith.constant 0 : index
    %c0_6 = arith.constant 0 : index
    %4 = vector.load %arg3[%c0_4, %c0_5, %c0_6] : memref<1x8x1xf32, #tpu.memory_space<vmem>>, vector<1x8x1xf32>
    %5 = vector.shape_cast %4 : vector<1x8x1xf32> to vector<8x1xf32>
    %cst_7 = arith.constant dense<0.000000e+00> : vector<8xf32>
    %6 = vector.multi_reduction <add>, %3, %cst_7 [1] : vector<8x196xf32> to vector<8xf32>
    %7 = vector.shape_cast %6 : vector<8xf32> to vector<8x1xf32>
    %8 = arith.addf %5, %7 : vector<8x1xf32>
    %cst_8 = arith.constant dense<0xFF800000> : vector<1xf32>
    %9 = vector.multi_reduction <maximumf>, %8, %cst_8 [0] : vector<8x1xf32> to vector<1xf32>
    %10 = vector.shape_cast %9 : vector<1xf32> to vector<1x1xf32>
    %11 = vector.broadcast %10 : vector<1x1xf32> to vector<8x1xf32>
    %12 = arith.subf %8, %11 : vector<8x1xf32>
    %13 = math.exp %12 : vector<8x1xf32>
    %cst_9 = arith.constant dense<0.000000e+00> : vector<1xf32>
    %14 = vector.multi_reduction <add>, %13, %cst_9 [0] : vector<8x1xf32> to vector<1xf32>
    %15 = vector.shape_cast %14 : vector<1xf32> to vector<1x1xf32>
    %16 = vector.broadcast %15 : vector<1x1xf32> to vector<8x1xf32>
    %17 = arith.divf %13, %16 : vector<8x1xf32>
    %18 = vector.shape_cast %17 : vector<8x1xf32> to vector<8x1xf32>
    %19 = vector.broadcast %18 : vector<8x1xf32> to vector<8x128xf32>
    %c0_10 = arith.constant 0 : index
    %c0_11 = arith.constant 0 : index
    %c0_12 = arith.constant 0 : index
    %20 = vector.load %arg4[%c0_10, %c0_11, %c0_12] : memref<1x8x128xf32, #tpu.memory_space<vmem>>, vector<1x8x128xf32>
    %21 = vector.shape_cast %20 : vector<1x8x128xf32> to vector<8x128xf32>
    %22 = vector.shape_cast %19 : vector<8x128xf32> to vector<1x8x128xf32>
    tpu.vector_store %arg4[%c0_10, %c0_11, %c0_12], %22 {strides = array<i32>} : memref<1x8x128xf32, #tpu.memory_space<vmem>>, vector<1x8x128xf32>,
    return
  }
  func.func @transform_0(%arg0: i32) -> (i32, i32, i32) {
    %c0_i32 = arith.constant 0 : i32
    %c0_i32_0 = arith.constant 0 : i32
    %c0_i32_1 = arith.constant 0 : i32
    return %arg0, %c0_i32, %c0_i32_0 : i32, i32, i32
  }
  func.func @transform_1(%arg0: i32) -> (i32, i32) {
    %c0_i32 = arith.constant 0 : i32
    %c0_i32_0 = arith.constant 0 : i32
    %c0_i32_1 = arith.constant 0 : i32
    return %c0_i32, %c0_i32_0 : i32, i32
  }
  func.func @transform_2(%arg0: i32) -> (i32, i32, i32) {
    %c0_i32 = arith.constant 0 : i32
    %c0_i32_0 = arith.constant 0 : i32
    %c0_i32_1 = arith.constant 0 : i32
    return %arg0, %c0_i32, %c0_i32_0 : i32, i32, i32
  }
  func.func @transform_3(%arg0: i32) -> (i32, i32, i32) {
    %c0_i32 = arith.constant 0 : i32
    %c0_i32_0 = arith.constant 0 : i32
    %c0_i32_1 = arith.constant 0 : i32
    return %arg0, %c0_i32, %c0_i32_0 : i32, i32, i32
  }
}

</mosaic_0001>

<bundles_post_ra>
// kernel: tpu_custom_call.1
= control target key start
LH: loop header
LB: loop body
LE: loop exit
PB: predicated region body
PF: predicated region fallthrough
CT: control target
= control target key end

     0   :  { %8 = vsyncpa [#allocation3], 0  ;;  %s2350_s0 = inlined_call_operand.vmem [shape: f32[2,2048,196], index: 0, kind: input, shape index: {}]   ;;  %s2351_s1 = inlined_call_operand.vmem [shape: f32[8,2048], index: 1, kind: input, shape index: {}]   ;;  %s2352_s2 = inlined_call_operand.vmem [shape: f32[2,8,1], index: 2, kind: input, shape index: {}]   ;;  %s2353_s3 = inlined_call_operand.hbm [shape: f32[2,8,128], index: 3, kind: output, shape index: {}]  }
   0x1   :  { %10 = vsyncpa [#allocation3 + $0x1], 0  ;;  %s1646_s12 = smov 0   ;;  %s1648_s13 = smov 0  }
   0x2   :  { %s1650_s14 = smov 0   ;;  %s1652_s15 = smov 0  }
   0x3 LB: > { %s1667_s16 = sadd.s32 4294967295, %s1623_s15   ;;  %s1487_s17 = sadd.s32 4294967294, %s1623_s15   ;;  %s1623_s15 = sphi %s1652_s15, %s2359_s15   ;;  %s1619_s14 = sphi %s1650_s14, %s2358_s14   ;;  %s1615_s13 = sphi %s1648_s13, %s2357_s13   ;;  %s1611_s12 = sphi %s1646_s12, %s2356_s12  }
   0x4   : > { %s1671_s18 = sadd.s32 1, %s1623_s15   ;;  %s96_s19 = sadd.s32 1, %s1619_s14 }
   0x5   : > { %s93_s20 = ssub.s32 %s1623_s15, %s1671_s18  ;;  %p106_p0 = scmp.ne.s32.totalorder %s1619_s14, %s1615_s13 }
   0x6   : > { %p94_p1 = scmp.eq.s32.totalorder %s93_s20, 0  ;;  %p107_p2 = scmp.eq.s32.totalorder %s1667_s16, 1 }
   0x7   : > { %p112_p3 = scmp.ne.s32.totalorder %s1615_s13, %s1611_s12  ;;  %p113_p4 = scmp.eq.s32.totalorder %s1487_s17, 1 }
   0x8   : > { %s1682_s21 = scalar_select %p94_p1, %s1619_s14, %s96_s19  }
   0x9   : > { %p1684_p5 = por %p107_p2, %p106_p0  ;;  %p1688_p6 = por %p113_p4, %p112_p3 }
   0xa   : > { %p1490_p7 = scmp.ge.s32.totalorder %s1623_s15, 1  ;;  %p149_p8 = scmp.lt.s32.totalorder %s1623_s15, 3 }
   0xc   : > { %p150_p9 = pnand %p1490_p7, %p149_p8 }
   0xd   : > { %p177_p10 = scmp.lt.s32.totalorder (!%p150_p9), %s1667_s16, 1  ;;  %s1496_s6 = sshll.u32 (!%p150_p9), %s1667_s16, 3 }
   0xe   : > { %153 = sbr.rel (%p150_p9) target bundleno = 725 (0x2d5), region = 32  ;;  %s1411_s9 = scalar_lea.hbm (!%p150_p9), %s2353_s3, %s1496_s6 }
   0xf   : > { %s1415_s17 = sshll.u32 (!%p150_p9), %s1411_s9, 4  ;;  %s1581_s26 = scalar_lea.hbm (!%p150_p9), %s2353_s3, 16  ;;  %s1416_s17 = int_to_ptr.hbm [resolvable:$true] %s1415_s17 }
  0x10   : > { %s1575_s20 = sshra.s32 (!%p150_p9), %s1416_s17, 4  ;;  %s1576_s20 = int_to_ptr.hbm [resolvable:$true] %s1575_s20 }
  0x11   : > { %p1582_p0 = scmp.lt.s32.totalorder (!%p150_p9), %s1576_s20, %s2353_s3 }
  0x13   : > { %s1696_s24 = scalar_select %p177_p10, %s1667_s16, 1  ;;  %vm1355_vm0 = vcmask 556032   ;;  %vm1361_vm1 = vcmask 7168  }
  0x15   : > { %s1499_s25 = sshll.u32 %s1696_s24, 12  ;;  %s1494_s27 = sshll.u32 %s1696_s24, 3 }
  0x16   : > { %s1702_s28 = scalar_lea.vmem %s2350_s0, %s1499_s25  ;;  %s185_s4 = scalar_lea.vmem %s2352_s2, %s1494_s27 }
  0x17   : > { %v232_v0 = vld [vmem:[%s1702_s28 + $0xf0] sm:$0xff]  ;;  %v230_v2 = vld [vmem:[%s1702_s28 + $0xe0] sm:$0xff]  ;;  %s174_s24 = sand.u32 1, %s1615_s13   ;;  %s1577_s25 = scalar_lea.hbm %s1576_s20, 8 }
  0x18   : > { %v296_v1 = vld [vmem:[%s1702_s28 + $0x2f0] sm:$0xff]  ;;  %714 = vmatpush.msra.mxu0 %v232_v0  ;;  %v294_v4 = vld [vmem:[%s1702_s28 + $0x2e0] sm:$0xff]  ;;  %s1491_s5 = sshll.u32 %s174_s24, 3  ;;  %s1401_s19 = scalar_lea.sflag [#allocation3], %s174_s24 }
  0x19   : > { %754 = vmatpush.msra.mxu2 %v296_v1  ;;  %v264_v3 = vld [vmem:[%s1702_s28 + $0x1f0] sm:$0xff]  ;;  %v262_v7 = vld [vmem:[%s1702_s28 + $0x1e0] sm:$0xff]  ;;  %s176_s10 = scalar_lea.vmem [#allocation2], %s1491_s5  ;;  %p1578_p11 = scmp.ne.s32.totalorder %s1576_s20, %s1577_s25 }
  0x1a   : > { %v328_v5 = vld [vmem:[%s1702_s28 + $0x3f0] sm:$0xff]  ;;  %734 = vmatpush.msra.mxu1 %v264_v3  ;;  %715 = vmatpush.msra.mxu0 %v230_v2  ;;  %v326_v9 = vld [vmem:[%s1702_s28 + $0x3e0] sm:$0xff]  ;;  %s1413_s11 = sshll.u32 %s176_s10, 4  ;;  %p1583_p1 = scmp.lt.s32.totalorder %s1581_s26, %s1577_s25  ;;  %s1414_s11 = int_to_ptr.vmem [resolvable:$true] %s1413_s11 }
  0x1b   : > { %774 = vmatpush.msra.mxu3 %v328_v5  ;;  %v228_v6 = vld [vmem:[%s1702_s28 + $0xd0] sm:$0xff]  ;;  %755 = vmatpush.msra.mxu2 %v294_v4  ;;  %v226_v11 = vld [vmem:[%s1702_s28 + $0xc0] sm:$0xff]  ;;  %p1579_p12 = pnand %p1578_p11, %p1684_p5 }
  0x1c   : > { %v292_v8 = vld [vmem:[%s1702_s28 + $0x2d0] sm:$0xff]  ;;  %735 = vmatpush.msra.mxu1 %v262_v7  ;;  %v290_v12 = vld [vmem:[%s1702_s28 + $0x2c0] sm:$0xff]  ;;  %716 = vmatpush.msra.mxu0 %v228_v6  ;;  %p1584_p2 = por %p1583_p1, %p1582_p0 }
  0x1d   : > { %v260_v10 = vld [vmem:[%s1702_s28 + $0x1d0] sm:$0xff]  ;;  %775 = vmatpush.msra.mxu3 %v326_v9  ;;  %756 = vmatpush.msra.mxu2 %v292_v8  ;;  %v258_v14 = vld [vmem:[%s1702_s28 + $0x1c0] sm:$0xff]  ;;  %p1580_p13 = pneg %p1579_p12 }
  0x1e   : > { %v324_v13 = vld [vmem:[%s1702_s28 + $0x3d0] sm:$0xff]  ;;  %v322_v15 = vld [vmem:[%s1702_s28 + $0x3c0] sm:$0xff]  ;;  %736 = vmatpush.msra.mxu1 %v260_v10  ;;  %717 = vmatpush.msra.mxu0 %v226_v11 }
  0x1f   : > { %776 = vmatpush.msra.mxu3 %v324_v13  ;;  %v224_v16 = vld [vmem:[%s1702_s28 + $0xb0] sm:$0xff]  ;;  %757 = vmatpush.msra.mxu2 %v290_v12  ;;  %v222_v20 = vld [vmem:[%s1702_s28 + $0xa0] sm:$0xff]  ;;  %p1585_p3 = pnand %p1584_p2, %p1580_p13 }
  0x20   : > { %v288_v17 = vld [vmem:[%s1702_s28 + $0x2b0] sm:$0xff]  ;;  %737 = vmatpush.msra.mxu1 %v258_v14  ;;  %v286_v21 = vld [vmem:[%s1702_s28 + $0x2a0] sm:$0xff]  ;;  %718 = vmatpush.msra.mxu0 %v224_v16 }
  0x21   : > { %v256_v18 = vld [vmem:[%s1702_s28 + $0x1b0] sm:$0xff]  ;;  %777 = vmatpush.msra.mxu3 %v322_v15  ;;  %758 = vmatpush.msra.mxu2 %v288_v17  ;;  %v254_v22 = vld [vmem:[%s1702_s28 + $0x1a0] sm:$0xff] }
  0x22   : > { %v320_v19 = vld [vmem:[%s1702_s28 + $0x3b0] sm:$0xff]  ;;  %v318_v23 = vld [vmem:[%s1702_s28 + $0x3a0] sm:$0xff]  ;;  %738 = vmatpush.msra.mxu1 %v256_v18  ;;  %719 = vmatpush.msra.mxu0 %v222_v20 }
  0x23   : > { %778 = vmatpush.msra.mxu3 %v320_v19  ;;  %v220_v24 = vld [vmem:[%s1702_s28 + $0x90] sm:$0xff]  ;;  %759 = vmatpush.msra.mxu2 %v286_v21  ;;  %v218_v28 = vld [vmem:[%s1702_s28 + $0x80] sm:$0xff] }
  0x24   : > { %v284_v25 = vld [vmem:[%s1702_s28 + $0x290] sm:$0xff]  ;;  %739 = vmatpush.msra.mxu1 %v254_v22  ;;  %v282_v29 = vld [vmem:[%s1702_s28 + $0x280] sm:$0xff]  ;;  %720 = vmatpush.msra.mxu0 %v220_v24 }
  0x25   : > { %v252_v26 = vld [vmem:[%s1702_s28 + $0x190] sm:$0xff]  ;;  %779 = vmatpush.msra.mxu3 %v318_v23  ;;  %760 = vmatpush.msra.mxu2 %v284_v25  ;;  %v250_v30 = vld [vmem:[%s1702_s28 + $0x180] sm:$0xff] }
  0x26   : > { %v316_v27 = vld [vmem:[%s1702_s28 + $0x390] sm:$0xff]  ;;  %v314_v31 = vld [vmem:[%s1702_s28 + $0x380] sm:$0xff]  ;;  %740 = vmatpush.msra.mxu1 %v252_v26  ;;  %721 = vmatpush.msra.mxu0 %v218_v28 }
  0x27   : > { %780 = vmatpush.msra.mxu3 %v316_v27  ;;  %v216_v32 = vld [vmem:[%s1702_s28 + $0x70] sm:$0xff]  ;;  %761 = vmatpush.msra.mxu2 %v282_v29  ;;  %v214_v36 = vld [vmem:[%s1702_s28 + $0x60] sm:$0xff] }
  0x28   : > { %v280_v33 = vld [vmem:[%s1702_s28 + $0x270] sm:$0xff]  ;;  %741 = vmatpush.msra.mxu1 %v250_v30  ;;  %v278_v37 = vld [vmem:[%s1702_s28 + $0x260] sm:$0xff]  ;;  %722 = vmatpush.msra.mxu0 %v216_v32 }
  0x29   : > { %v248_v34 = vld [vmem:[%s1702_s28 + $0x170] sm:$0xff]  ;;  %781 = vmatpush.msra.mxu3 %v314_v31  ;;  %762 = vmatpush.msra.mxu2 %v280_v33  ;;  %v246_v38 = vld [vmem:[%s1702_s28 + $0x160] sm:$0xff] }
  0x2a   : > { %v312_v35 = vld [vmem:[%s1702_s28 + $0x370] sm:$0xff]  ;;  %v310_v39 = vld [vmem:[%s1702_s28 + $0x360] sm:$0xff]  ;;  %742 = vmatpush.msra.mxu1 %v248_v34  ;;  %723 = vmatpush.msra.mxu0 %v214_v36 }
  0x2b   : > { %782 = vmatpush.msra.mxu3 %v312_v35  ;;  %v212_v40 = vld [vmem:[%s1702_s28 + $0x50] sm:$0xff]  ;;  %763 = vmatpush.msra.mxu2 %v278_v37  ;;  %v210_v44 = vld [vmem:[%s1702_s28 + $0x40] sm:$0xff] }
  0x2c   : > { %v276_v41 = vld [vmem:[%s1702_s28 + $0x250] sm:$0xff]  ;;  %743 = vmatpush.msra.mxu1 %v246_v38  ;;  %v274_v45 = vld [vmem:[%s1702_s28 + $0x240] sm:$0xff]  ;;  %724 = vmatpush.msra.mxu0 %v212_v40 }
  0x2d   : > { %v244_v42 = vld [vmem:[%s1702_s28 + $0x150] sm:$0xff]  ;;  %783 = vmatpush.msra.mxu3 %v310_v39  ;;  %764 = vmatpush.msra.mxu2 %v276_v41  ;;  %v242_v46 = vld [vmem:[%s1702_s28 + $0x140] sm:$0xff] }
  0x2e   : > { %v308_v43 = vld [vmem:[%s1702_s28 + $0x350] sm:$0xff]  ;;  %v306_v47 = vld [vmem:[%s1702_s28 + $0x340] sm:$0xff]  ;;  %744 = vmatpush.msra.mxu1 %v244_v42  ;;  %725 = vmatpush.msra.mxu0 %v210_v44 }
  0x2f   : > { %784 = vmatpush.msra.mxu3 %v308_v43  ;;  %v208_v48 = vld [vmem:[%s1702_s28 + $0x30] sm:$0xff]  ;;  %765 = vmatpush.msra.mxu2 %v274_v45  ;;  %v206_v52 = vld [vmem:[%s1702_s28 + $0x20] sm:$0xff] }
  0x30   : > { %v272_v49 = vld [vmem:[%s1702_s28 + $0x230] sm:$0xff]  ;;  %745 = vmatpush.msra.mxu1 %v242_v46  ;;  %v270_v53 = vld [vmem:[%s1702_s28 + $0x220] sm:$0xff]  ;;  %726 = vmatpush.msra.mxu0 %v208_v48 }
  0x31   : > { %v240_v50 = vld [vmem:[%s1702_s28 + $0x130] sm:$0xff]  ;;  %785 = vmatpush.msra.mxu3 %v306_v47  ;;  %766 = vmatpush.msra.mxu2 %v272_v49  ;;  %v238_v54 = vld [vmem:[%s1702_s28 + $0x120] sm:$0xff] }
  0x32   : > { %v304_v51 = vld [vmem:[%s1702_s28 + $0x330] sm:$0xff]  ;;  %v302_v55 = vld [vmem:[%s1702_s28 + $0x320] sm:$0xff]  ;;  %746 = vmatpush.msra.mxu1 %v240_v50  ;;  %727 = vmatpush.msra.mxu0 %v206_v52 }
  0x33   : > { %786 = vmatpush.msra.mxu3 %v304_v51  ;;  %v204_v56 = vld [vmem:[%s1702_s28 + $0x10] sm:$0xff]  ;;  %767 = vmatpush.msra.mxu2 %v270_v53  ;;  %v202_v60 = vld [vmem:[%s1702_s28] sm:$0xff] }
  0x34   : > { %v268_v57 = vld [vmem:[%s1702_s28 + $0x210] sm:$0xff]  ;;  %747 = vmatpush.msra.mxu1 %v238_v54  ;;  %v266_v61 = vld [vmem:[%s1702_s28 + $0x200] sm:$0xff]  ;;  %728 = vmatpush.msra.mxu0 %v204_v56 }
  0x35   : > { %v236_v58 = vld [vmem:[%s1702_s28 + $0x110] sm:$0xff]  ;;  %787 = vmatpush.msra.mxu3 %v302_v55  ;;  %768 = vmatpush.msra.mxu2 %v268_v57  ;;  %v234_v0 = vld [vmem:[%s1702_s28 + $0x100] sm:$0xff] }
  0x36   : > { %v300_v59 = vld [vmem:[%s1702_s28 + $0x310] sm:$0xff]  ;;  %748 = vmatpush.msra.mxu1 %v236_v58  ;;  %v298_v1 = vld [vmem:[%s1702_s28 + $0x300] sm:$0xff]  ;;  %729 = vmatpush.msra.mxu0 %v202_v60 }
  0x37   : > { %v360_v62 = vld [vmem:[%s1702_s28 + $0x4f0] sm:$0xff]  ;;  %788 = vmatpush.msra.mxu3 %v300_v59  ;;  %769 = vmatpush.msra.mxu2 %v266_v61  ;;  %v358_v2 = vld [vmem:[%s1702_s28 + $0x4e0] sm:$0xff] }
  0x38   : > { %v424_v63 = vld [vmem:[%s1702_s28 + $0x6f0] sm:$0xff]  ;;  %794 = vmatpush.msrb.mxu0 %v360_v62  ;;  %v422_v4 = vld [vmem:[%s1702_s28 + $0x6e0] sm:$0xff]  ;;  %749 = vmatpush.msra.mxu1 %v234_v0  ;;  %v189_v0 = vld [vmem:[%s2351_s1 + $0x18] sm:$0xff] }
  0x39   : > { %v392_v3 = vld [vmem:[%s1702_s28 + $0x5f0] sm:$0xff]  ;;  %834 = vmatpush.msrb.mxu2 %v424_v63  ;;  %789 = vmatpush.msra.mxu3 %v298_v1  ;;  %v390_v7 = vld [vmem:[%s1702_s28 + $0x5e0] sm:$0xff] }
  0x3a   : > { %v456_v5 = vld [vmem:[%s1702_s28 + $0x7f0] sm:$0xff]  ;;  %795 = vmatpush.msrb.mxu0 %v358_v2  ;;  %814 = vmatpush.msrb.mxu1 %v392_v3  ;;  %v454_v9 = vld [vmem:[%s1702_s28 + $0x7e0] sm:$0xff] }
  0x3b   : > { %v356_v6 = vld [vmem:[%s1702_s28 + $0x4d0] sm:$0xff]  ;;  %835 = vmatpush.msrb.mxu2 %v422_v4  ;;  %854 = vmatpush.msrb.mxu3 %v456_v5  ;;  %v354_v10 = vld [vmem:[%s1702_s28 + $0x4c0] sm:$0xff]  ;;  %v187_v5 = vld [vmem:[%s2351_s1 + $0x8] sm:$0xff] }
  0x3c   : > { %v420_v8 = vld [vmem:[%s1702_s28 + $0x6d0] sm:$0xff]  ;;  %796 = vmatpush.msrb.mxu0 %v356_v6  ;;  %815 = vmatpush.msrb.mxu1 %v390_v7  ;;  %v418_v12 = vld [vmem:[%s1702_s28 + $0x6c0] sm:$0xff] }
  0x3d   : > { %v388_v11 = vld [vmem:[%s1702_s28 + $0x5d0] sm:$0xff]  ;;  %836 = vmatpush.msrb.mxu2 %v420_v8  ;;  %855 = vmatpush.msrb.mxu3 %v454_v9  ;;  %v386_v15 = vld [vmem:[%s1702_s28 + $0x5c0] sm:$0xff] }
  0x3e   : > { %v452_v13 = vld [vmem:[%s1702_s28 + $0x7d0] sm:$0xff]  ;;  %797 = vmatpush.msrb.mxu0 %v354_v10  ;;  %816 = vmatpush.msrb.mxu1 %v388_v11  ;;  %v450_v17 = vld [vmem:[%s1702_s28 + $0x7c0] sm:$0xff] }
  0x3f   : > { %v352_v14 = vld [vmem:[%s1702_s28 + $0x4b0] sm:$0xff]  ;;  %837 = vmatpush.msrb.mxu2 %v418_v12  ;;  %856 = vmatpush.msrb.mxu3 %v452_v13  ;;  %v350_v18 = vld [vmem:[%s1702_s28 + $0x4a0] sm:$0xff] }
  0x40   : > { %v416_v16 = vld [vmem:[%s1702_s28 + $0x6b0] sm:$0xff]  ;;  %798 = vmatpush.msrb.mxu0 %v352_v14  ;;  %817 = vmatpush.msrb.mxu1 %v386_v15  ;;  %v414_v20 = vld [vmem:[%s1702_s28 + $0x6a0] sm:$0xff] }
  0x41   : > { %v384_v19 = vld [vmem:[%s1702_s28 + $0x5b0] sm:$0xff]  ;;  %838 = vmatpush.msrb.mxu2 %v416_v16  ;;  %857 = vmatpush.msrb.mxu3 %v450_v17  ;;  %v382_v23 = vld [vmem:[%s1702_s28 + $0x5a0] sm:$0xff] }
  0x42   : > { %v448_v21 = vld [vmem:[%s1702_s28 + $0x7b0] sm:$0xff]  ;;  %799 = vmatpush.msrb.mxu0 %v350_v18  ;;  %818 = vmatpush.msrb.mxu1 %v384_v19  ;;  %v446_v25 = vld [vmem:[%s1702_s28 + $0x7a0] sm:$0xff] }
  0x43   : > { %v348_v22 = vld [vmem:[%s1702_s28 + $0x490] sm:$0xff]  ;;  %839 = vmatpush.msrb.mxu2 %v414_v20  ;;  %858 = vmatpush.msrb.mxu3 %v448_v21  ;;  %v346_v26 = vld [vmem:[%s1702_s28 + $0x480] sm:$0xff]  ;;  %v193_v20 = vld [vmem:[%s2351_s1 + $0x38] sm:$0xff] }
  0x44   : > { %v412_v24 = vld [vmem:[%s1702_s28 + $0x690] sm:$0xff]  ;;  %800 = vmatpush.msrb.mxu0 %v348_v22  ;;  %819 = vmatpush.msrb.mxu1 %v382_v23  ;;  %v410_v28 = vld [vmem:[%s1702_s28 + $0x680] sm:$0xff] }
  0x45   : > { %v380_v27 = vld [vmem:[%s1702_s28 + $0x590] sm:$0xff]  ;;  %840 = vmatpush.msrb.mxu2 %v412_v24  ;;  %859 = vmatpush.msrb.mxu3 %v446_v25  ;;  %v378_v31 = vld [vmem:[%s1702_s28 + $0x580] sm:$0xff]  ;;  %v191_v25 = vld [vmem:[%s2351_s1 + $0x28] sm:$0xff] }
  0x46   : > { %v444_v29 = vld [vmem:[%s1702_s28 + $0x790] sm:$0xff]  ;;  %801 = vmatpush.msrb.mxu0 %v346_v26  ;;  %820 = vmatpush.msrb.mxu1 %v380_v27  ;;  %v442_v33 = vld [vmem:[%s1702_s28 + $0x780] sm:$0xff] }
  0x47   : > { %v344_v30 = vld [vmem:[%s1702_s28 + $0x470] sm:$0xff]  ;;  %841 = vmatpush.msrb.mxu2 %v410_v28  ;;  %860 = vmatpush.msrb.mxu3 %v444_v29  ;;  %v342_v34 = vld [vmem:[%s1702_s28 + $0x460] sm:$0xff] }
  0x48   : > { %v408_v32 = vld [vmem:[%s1702_s28 + $0x670] sm:$0xff]  ;;  %802 = vmatpush.msrb.mxu0 %v344_v30  ;;  %821 = vmatpush.msrb.mxu1 %v378_v31  ;;  %v406_v36 = vld [vmem:[%s1702_s28 + $0x660] sm:$0xff] }
  0x49   : > { %v376_v35 = vld [vmem:[%s1702_s28 + $0x570] sm:$0xff]  ;;  %842 = vmatpush.msrb.mxu2 %v408_v32  ;;  %861 = vmatpush.msrb.mxu3 %v442_v33  ;;  %v374_v39 = vld [vmem:[%s1702_s28 + $0x560] sm:$0xff] }
  0x4a   : > { %v440_v37 = vld [vmem:[%s1702_s28 + $0x770] sm:$0xff]  ;;  %803 = vmatpush.msrb.mxu0 %v342_v34  ;;  %822 = vmatpush.msrb.mxu1 %v376_v35  ;;  %v438_v41 = vld [vmem:[%s1702_s28 + $0x760] sm:$0xff] }
  0x4b   : > { %v340_v38 = vld [vmem:[%s1702_s28 + $0x450] sm:$0xff]  ;;  %843 = vmatpush.msrb.mxu2 %v406_v36  ;;  %862 = vmatpush.msrb.mxu3 %v440_v37  ;;  %v338_v42 = vld [vmem:[%s1702_s28 + $0x440] sm:$0xff] }
  0x4c   : > { %v404_v40 = vld [vmem:[%s1702_s28 + $0x650] sm:$0xff]  ;;  %804 = vmatpush.msrb.mxu0 %v340_v38  ;;  %823 = vmatpush.msrb.mxu1 %v374_v39  ;;  %v402_v44 = vld [vmem:[%s1702_s28 + $0x640] sm:$0xff] }
  0x4d   : > { %v372_v43 = vld [vmem:[%s1702_s28 + $0x550] sm:$0xff]  ;;  %844 = vmatpush.msrb.mxu2 %v404_v40  ;;  %863 = vmatpush.msrb.mxu3 %v438_v41  ;;  %v370_v47 = vld [vmem:[%s1702_s28 + $0x540] sm:$0xff] }
  0x4e   : > { %v436_v45 = vld [vmem:[%s1702_s28 + $0x750] sm:$0xff]  ;;  %805 = vmatpush.msrb.mxu0 %v338_v42  ;;  %824 = vmatpush.msrb.mxu1 %v372_v43  ;;  %v434_v49 = vld [vmem:[%s1702_s28 + $0x740] sm:$0xff] }
  0x4f   : > { %v336_v46 = vld [vmem:[%s1702_s28 + $0x430] sm:$0xff]  ;;  %845 = vmatpush.msrb.mxu2 %v402_v44  ;;  %864 = vmatpush.msrb.mxu3 %v436_v45  ;;  %v334_v50 = vld [vmem:[%s1702_s28 + $0x420] sm:$0xff] }
  0x50   : > { %v400_v48 = vld [vmem:[%s1702_s28 + $0x630] sm:$0xff]  ;;  %806 = vmatpush.msrb.mxu0 %v336_v46  ;;  %825 = vmatpush.msrb.mxu1 %v370_v47  ;;  %v398_v52 = vld [vmem:[%s1702_s28 + $0x620] sm:$0xff] }
  0x51   : > { %v368_v51 = vld [vmem:[%s1702_s28 + $0x530] sm:$0xff]  ;;  %846 = vmatpush.msrb.mxu2 %v400_v48  ;;  %865 = vmatpush.msrb.mxu3 %v434_v49  ;;  %v366_v55 = vld [vmem:[%s1702_s28 + $0x520] sm:$0xff] }
  0x52   : > { %v432_v53 = vld [vmem:[%s1702_s28 + $0x730] sm:$0xff]  ;;  %807 = vmatpush.msrb.mxu0 %v334_v50  ;;  %826 = vmatpush.msrb.mxu1 %v368_v51  ;;  %v430_v57 = vld [vmem:[%s1702_s28 + $0x720] sm:$0xff] }
  0x53   : > { %v332_v54 = vld [vmem:[%s1702_s28 + $0x410] sm:$0xff]  ;;  %847 = vmatpush.msrb.mxu2 %v398_v52  ;;  %866 = vmatpush.msrb.mxu3 %v432_v53  ;;  %v330_v59 = vld [vmem:[%s1702_s28 + $0x400] sm:$0xff] }
  0x54   : > { %v396_v56 = vld [vmem:[%s1702_s28 + $0x610] sm:$0xff]  ;;  %808 = vmatpush.msrb.mxu0 %v332_v54  ;;  %827 = vmatpush.msrb.mxu1 %v366_v55  ;;  %v394_v61 = vld [vmem:[%s1702_s28 + $0x600] sm:$0xff] }
  0x55   : > { %v188_v58 = vld [vmem:[%s2351_s1 + $0x10] sm:$0xff]  ;;  %848 = vmatpush.msrb.mxu2 %v396_v56  ;;  %867 = vmatpush.msrb.mxu3 %v430_v57  ;;  %v186_v63 = vld [vmem:[%s2351_s1] sm:$0xff] }
  0x56   : > { %v364_v60 = vld [vmem:[%s1702_s28 + $0x510] sm:$0xff]  ;;  %770 = vmatmul.f32.vlgmr.msra.gmra.mxu2 %v188_v58  ;;  %809 = vmatpush.msrb.mxu0 %v330_v59  ;;  %v362_v3 = vld [vmem:[%s1702_s28 + $0x500] sm:$0xff] }
  0x57   : > { %v428_v62 = vld [vmem:[%s1702_s28 + $0x710] sm:$0xff]  ;;  %828 = vmatpush.msrb.mxu1 %v364_v60  ;;  %849 = vmatpush.msrb.mxu2 %v394_v61  ;;  %v426_v4 = vld [vmem:[%s1702_s28 + $0x700] sm:$0xff] }
  0x58   : > { %v488_v1 = vld [vmem:[%s1702_s28 + $0x8f0] sm:$0xff]  ;;  %868 = vmatpush.msrb.mxu3 %v428_v62  ;;  %730 = vmatmul.f32.vlgmr.msra.gmra.mxu0 %v186_v63  ;;  %v486_v6 = vld [vmem:[%s1702_s28 + $0x8e0] sm:$0xff] }
  0x59   : > { %v552_v2 = vld [vmem:[%s1702_s28 + $0xaf0] sm:$0xff]  ;;  %790 = vmatmul.f32.vlgmr.msra.gmra.mxu3 %v189_v0  ;;  %874 = vmatpush.msra.mxu0 %v488_v1  ;;  %v550_v8 = vld [vmem:[%s1702_s28 + $0xae0] sm:$0xff] }
  0x5a   : > { %v520_v7 = vld [vmem:[%s1702_s28 + $0x9f0] sm:$0xff]  ;;  %914 = vmatpush.msra.mxu2 %v552_v2  ;;  %829 = vmatpush.msrb.mxu1 %v362_v3  ;;  %v518_v11 = vld [vmem:[%s1702_s28 + $0x9e0] sm:$0xff] }
  0x5b   : > { %v584_v9 = vld [vmem:[%s1702_s28 + $0xbf0] sm:$0xff]  ;;  %869 = vmatpush.msrb.mxu3 %v426_v4  ;;  %750 = vmatmul.f32.vlgmr.msra.gmra.mxu1 %v187_v5  ;;  %v582_v13 = vld [vmem:[%s1702_s28 + $0xbe0] sm:$0xff] }
  0x5c   : > { %v484_v10 = vld [vmem:[%s1702_s28 + $0x8d0] sm:$0xff]  ;;  %875 = vmatpush.msra.mxu0 %v486_v6  ;;  %894 = vmatpush.msra.mxu1 %v520_v7  ;;  %v482_v15 = vld [vmem:[%s1702_s28 + $0x8c0] sm:$0xff] }
  0x5d   : > { %v548_v12 = vld [vmem:[%s1702_s28 + $0xad0] sm:$0xff]  ;;  %915 = vmatpush.msra.mxu2 %v550_v8  ;;  %934 = vmatpush.msra.mxu3 %v584_v9  ;;  %v546_v17 = vld [vmem:[%s1702_s28 + $0xac0] sm:$0xff] }
  0x5e   : > { %v192_v14 = vld [vmem:[%s2351_s1 + $0x30] sm:$0xff]  ;;  %876 = vmatpush.msra.mxu0 %v484_v10  ;;  %895 = vmatpush.msra.mxu1 %v518_v11  ;;  %v190_v19 = vld [vmem:[%s2351_s1 + $0x20] sm:$0xff] }
  0x5f   : > { %v516_v16 = vld [vmem:[%s1702_s28 + $0x9d0] sm:$0xff]  ;;  %916 = vmatpush.msra.mxu2 %v548_v12  ;;  %935 = vmatpush.msra.mxu3 %v582_v13  ;;  %v514_v22 = vld [vmem:[%s1702_s28 + $0x9c0] sm:$0xff]  ;;  %v195_v12 = vld [vmem:[%s2351_s1 + $0x48] sm:$0xff] }
  0x60   : > { %v580_v18 = vld [vmem:[%s1702_s28 + $0xbd0] sm:$0xff]  ;;  %850 = vmatmul.f32.vlgmr.msrb.gmra.mxu2 %v192_v14  ;;  %877 = vmatpush.msra.mxu0 %v482_v15  ;;  %v578_v24 = vld [vmem:[%s1702_s28 + $0xbc0] sm:$0xff]  ;;  %v197_v13 = vld [vmem:[%s2351_s1 + $0x58] sm:$0xff] }
  0x61   : > { %v480_v21 = vld [vmem:[%s1702_s28 + $0x8b0] sm:$0xff]  ;;  %896 = vmatpush.msra.mxu1 %v516_v16  ;;  %917 = vmatpush.msra.mxu2 %v546_v17  ;;  %v478_v26 = vld [vmem:[%s1702_s28 + $0x8a0] sm:$0xff] }
  0x62   : > { %v544_v23 = vld [vmem:[%s1702_s28 + $0xab0] sm:$0xff]  ;;  %936 = vmatpush.msra.mxu3 %v580_v18  ;;  %810 = vmatmul.f32.vlgmr.msrb.gmra.mxu0 %v190_v19  ;;  %v542_v28 = vld [vmem:[%s1702_s28 + $0xaa0] sm:$0xff] }
  0x63   : > { %870 = vmatmul.f32.vlgmr.msrb.gmra.mxu3 %v193_v20  ;;  %878 = vmatpush.msra.mxu0 %v480_v21  ;;  %v512_v27 = vld [vmem:[%s1702_s28 + $0x9b0] sm:$0xff]  ;;  %v510_v31 = vld [vmem:[%s1702_s28 + $0x9a0] sm:$0xff] }
  0x64   : > { %897 = vmatpush.msra.mxu1 %v514_v22  ;;  %918 = vmatpush.msra.mxu2 %v544_v23  ;;  %v576_v29 = vld [vmem:[%s1702_s28 + $0xbb0] sm:$0xff]  ;;  %v574_v33 = vld [vmem:[%s1702_s28 + $0xba0] sm:$0xff] }
  0x65   : > { %937 = vmatpush.msra.mxu3 %v578_v24  ;;  %830 = vmatmul.f32.vlgmr.msrb.gmra.mxu1 %v191_v25  ;;  %v476_v30 = vld [vmem:[%s1702_s28 + $0x890] sm:$0xff]  ;;  %v474_v34 = vld [vmem:[%s1702_s28 + $0x880] sm:$0xff] }
  0x66   : > { %879 = vmatpush.msra.mxu0 %v478_v26  ;;  %898 = vmatpush.msra.mxu1 %v512_v27  ;;  %v540_v32 = vld [vmem:[%s1702_s28 + $0xa90] sm:$0xff]  ;;  %v538_v36 = vld [vmem:[%s1702_s28 + $0xa80] sm:$0xff] }
  0x67   : > { %919 = vmatpush.msra.mxu2 %v542_v28  ;;  %938 = vmatpush.msra.mxu3 %v576_v29  ;;  %v508_v35 = vld [vmem:[%s1702_s28 + $0x990] sm:$0xff]  ;;  %v506_v39 = vld [vmem:[%s1702_s28 + $0x980] sm:$0xff] }
  0x68   : > { %880 = vmatpush.msra.mxu0 %v476_v30  ;;  %899 = vmatpush.msra.mxu1 %v510_v31  ;;  %v572_v37 = vld [vmem:[%s1702_s28 + $0xb90] sm:$0xff]  ;;  %v570_v41 = vld [vmem:[%s1702_s28 + $0xb80] sm:$0xff] }
  0x69   : > { %920 = vmatpush.msra.mxu2 %v540_v32  ;;  %939 = vmatpush.msra.mxu3 %v574_v33  ;;  %v472_v38 = vld [vmem:[%s1702_s28 + $0x870] sm:$0xff]  ;;  %v470_v42 = vld [vmem:[%s1702_s28 + $0x860] sm:$0xff] }
  0x6a   : > { %881 = vmatpush.msra.mxu0 %v474_v34  ;;  %900 = vmatpush.msra.mxu1 %v508_v35  ;;  %v536_v40 = vld [vmem:[%s1702_s28 + $0xa70] sm:$0xff]  ;;  %v534_v44 = vld [vmem:[%s1702_s28 + $0xa60] sm:$0xff] }
  0x6b   : > { %921 = vmatpush.msra.mxu2 %v538_v36  ;;  %940 = vmatpush.msra.mxu3 %v572_v37  ;;  %v504_v43 = vld [vmem:[%s1702_s28 + $0x970] sm:$0xff]  ;;  %v502_v47 = vld [vmem:[%s1702_s28 + $0x960] sm:$0xff] }
  0x6c   : > { %882 = vmatpush.msra.mxu0 %v472_v38  ;;  %901 = vmatpush.msra.mxu1 %v506_v39  ;;  %v568_v45 = vld [vmem:[%s1702_s28 + $0xb70] sm:$0xff]  ;;  %v566_v49 = vld [vmem:[%s1702_s28 + $0xb60] sm:$0xff] }
  0x6d   : > { %922 = vmatpush.msra.mxu2 %v536_v40  ;;  %941 = vmatpush.msra.mxu3 %v570_v41  ;;  %v468_v46 = vld [vmem:[%s1702_s28 + $0x850] sm:$0xff]  ;;  %v466_v50 = vld [vmem:[%s1702_s28 + $0x840] sm:$0xff] }
  0x6e   : > { %883 = vmatpush.msra.mxu0 %v470_v42  ;;  %902 = vmatpush.msra.mxu1 %v504_v43  ;;  %v532_v48 = vld [vmem:[%s1702_s28 + $0xa50] sm:$0xff]  ;;  %v530_v52 = vld [vmem:[%s1702_s28 + $0xa40] sm:$0xff] }
  0x6f   : > { %923 = vmatpush.msra.mxu2 %v534_v44  ;;  %942 = vmatpush.msra.mxu3 %v568_v45  ;;  %v500_v51 = vld [vmem:[%s1702_s28 + $0x950] sm:$0xff]  ;;  %v498_v55 = vld [vmem:[%s1702_s28 + $0x940] sm:$0xff] }
  0x70   : > { %884 = vmatpush.msra.mxu0 %v468_v46  ;;  %903 = vmatpush.msra.mxu1 %v502_v47  ;;  %v564_v53 = vld [vmem:[%s1702_s28 + $0xb50] sm:$0xff]  ;;  %v562_v57 = vld [vmem:[%s1702_s28 + $0xb40] sm:$0xff] }
  0x71   : > { %924 = vmatpush.msra.mxu2 %v532_v48  ;;  %943 = vmatpush.msra.mxu3 %v566_v49  ;;  %v464_v54 = vld [vmem:[%s1702_s28 + $0x830] sm:$0xff]  ;;  %v462_v58 = vld [vmem:[%s1702_s28 + $0x820] sm:$0xff] }
  0x72   : > { %885 = vmatpush.msra.mxu0 %v466_v50  ;;  %904 = vmatpush.msra.mxu1 %v500_v51  ;;  %v528_v56 = vld [vmem:[%s1702_s28 + $0xa30] sm:$0xff]  ;;  %v526_v60 = vld [vmem:[%s1702_s28 + $0xa20] sm:$0xff] }
  0x73   : > { %925 = vmatpush.msra.mxu2 %v530_v52  ;;  %944 = vmatpush.msra.mxu3 %v564_v53  ;;  %v496_v59 = vld [vmem:[%s1702_s28 + $0x930] sm:$0xff]  ;;  %v494_v63 = vld [vmem:[%s1702_s28 + $0x920] sm:$0xff] }
  0x74   : > { %886 = vmatpush.msra.mxu0 %v464_v54  ;;  %905 = vmatpush.msra.mxu1 %v498_v55  ;;  %v560_v61 = vld [vmem:[%s1702_s28 + $0xb30] sm:$0xff]  ;;  %v558_v1 = vld [vmem:[%s1702_s28 + $0xb20] sm:$0xff] }
  0x75   : > { %926 = vmatpush.msra.mxu2 %v528_v56  ;;  %945 = vmatpush.msra.mxu3 %v562_v57  ;;  %v460_v62 = vld [vmem:[%s1702_s28 + $0x810] sm:$0xff]  ;;  %v458_v2 = vld [vmem:[%s1702_s28 + $0x800] sm:$0xff] }
  0x76   : > { %887 = vmatpush.msra.mxu0 %v462_v58  ;;  %906 = vmatpush.msra.mxu1 %v496_v59  ;;  %v524_v0 = vld [vmem:[%s1702_s28 + $0xa10] sm:$0xff]  ;;  %v522_v4 = vld [vmem:[%s1702_s28 + $0xa00] sm:$0xff] }
  0x77   : > { %927 = vmatpush.msra.mxu2 %v526_v60  ;;  %946 = vmatpush.msra.mxu3 %v560_v61  ;;  %v492_v3 = vld [vmem:[%s1702_s28 + $0x910] sm:$0xff]  ;;  %v194_v6 = vld [vmem:[%s2351_s1 + $0x40] sm:$0xff] }
  0x78   : > { %888 = vmatpush.msra.mxu0 %v460_v62  ;;  %907 = vmatpush.msra.mxu1 %v494_v63  ;;  %v556_v5 = vld [vmem:[%s1702_s28 + $0xb10] sm:$0xff]  ;;  %v490_v10 = vld [vmem:[%s1702_s28 + $0x900] sm:$0xff] }
  0x79   : > { %928 = vmatpush.msra.mxu2 %v524_v0  ;;  %947 = vmatpush.msra.mxu3 %v558_v1  ;;  %v196_v7 = vld [vmem:[%s2351_s1 + $0x50] sm:$0xff]  ;;  %v554_v11 = vld [vmem:[%s1702_s28 + $0xb00] sm:$0xff] }
  0x7a   : > { %889 = vmatpush.msra.mxu0 %v458_v2  ;;  %908 = vmatpush.msra.mxu1 %v492_v3  ;;  %v616_v8 = vld [vmem:[%s1702_s28 + $0xcf0] sm:$0xff]  ;;  %v614_v14 = vld [vmem:[%s1702_s28 + $0xce0] sm:$0xff] }
  0x7b   : > { %v680_v9 = vld [vmem:[%s1702_s28 + $0xef0] sm:$0xff]  ;;  %929 = vmatpush.msra.mxu2 %v522_v4  ;;  %948 = vmatpush.msra.mxu3 %v556_v5  ;;  %v678_v16 = vld [vmem:[%s1702_s28 + $0xee0] sm:$0xff] }
  0x7c   : > { %890 = vmatmul.f32.vlgmr.msra.gmra.mxu0 %v194_v6  ;;  %930 = vmatmul.f32.vlgmr.msra.gmra.mxu2 %v196_v7  ;;  %v648_v15 = vld [vmem:[%s1702_s28 + $0xdf0] sm:$0xff]  ;;  %v646_v19 = vld [vmem:[%s1702_s28 + $0xde0] sm:$0xff] }
  0x7d   : > { %954 = vmatpush.msrb.mxu0 %v616_v8  ;;  %994 = vmatpush.msrb.mxu2 %v680_v9  ;;  %v712_v17 = vld [vmem:[%s1702_s28 + $0xff0] sm:$0xff]  ;;  %v710_v21 = vld [vmem:[%s1702_s28 + $0xfe0] sm:$0xff] }
  0x7e   : > { %909 = vmatpush.msra.mxu1 %v490_v10  ;;  %949 = vmatpush.msra.mxu3 %v554_v11  ;;  %v612_v18 = vld [vmem:[%s1702_s28 + $0xcd0] sm:$0xff]  ;;  %v610_v22 = vld [vmem:[%s1702_s28 + $0xcc0] sm:$0xff] }
  0x7f   : > { %910 = vmatmul.f32.vlgmr.msra.gmra.mxu1 %v195_v12  ;;  %950 = vmatmul.f32.vlgmr.msra.gmra.mxu3 %v197_v13  ;;  %v676_v20 = vld [vmem:[%s1702_s28 + $0xed0] sm:$0xff]  ;;  %v674_v24 = vld [vmem:[%s1702_s28 + $0xec0] sm:$0xff]  ;;  %v233_v12 = vld [vmem:[%s1702_s28 + $0xf8] sm:$0xff] }
  0x80   : > { %955 = vmatpush.msrb.mxu0 %v614_v14  ;;  %974 = vmatpush.msrb.mxu1 %v648_v15  ;;  %v644_v23 = vld [vmem:[%s1702_s28 + $0xdd0] sm:$0xff]  ;;  %v642_v27 = vld [vmem:[%s1702_s28 + $0xdc0] sm:$0xff]  ;;  %v297_v13 = vld [vmem:[%s1702_s28 + $0x2f8] sm:$0xff] }
  0x81   : > { %995 = vmatpush.msrb.mxu2 %v678_v16  ;;  %1014 = vmatpush.msrb.mxu3 %v712_v17  ;;  %v708_v25 = vld [vmem:[%s1702_s28 + $0xfd0] sm:$0xff]  ;;  %v706_v29 = vld [vmem:[%s1702_s28 + $0xfc0] sm:$0xff]  ;;  %v199_v16 = vld [vmem:[%s2351_s1 + $0x68] sm:$0xff] }
  0x82   : > { %956 = vmatpush.msrb.mxu0 %v612_v18  ;;  %975 = vmatpush.msrb.mxu1 %v646_v19  ;;  %v608_v26 = vld [vmem:[%s1702_s28 + $0xcb0] sm:$0xff]  ;;  %v606_v30 = vld [vmem:[%s1702_s28 + $0xca0] sm:$0xff]  ;;  %v201_v17 = vld [vmem:[%s2351_s1 + $0x78] sm:$0xff] }
  0x83   : > { %996 = vmatpush.msrb.mxu2 %v676_v20  ;;  %1015 = vmatpush.msrb.mxu3 %v710_v21  ;;  %v672_v28 = vld [vmem:[%s1702_s28 + $0xeb0] sm:$0xff]  ;;  %v670_v32 = vld [vmem:[%s1702_s28 + $0xea0] sm:$0xff]  ;;  %v231_v18 = vld [vmem:[%s1702_s28 + $0xe8] sm:$0xff] }
  0x84   : > { %957 = vmatpush.msrb.mxu0 %v610_v22  ;;  %976 = vmatpush.msrb.mxu1 %v644_v23  ;;  %v640_v31 = vld [vmem:[%s1702_s28 + $0xdb0] sm:$0xff]  ;;  %v638_v35 = vld [vmem:[%s1702_s28 + $0xda0] sm:$0xff]  ;;  %v265_v19 = vld [vmem:[%s1702_s28 + $0x1f8] sm:$0xff] }
  0x85   : > { %997 = vmatpush.msrb.mxu2 %v674_v24  ;;  %1016 = vmatpush.msrb.mxu3 %v708_v25  ;;  %v704_v33 = vld [vmem:[%s1702_s28 + $0xfb0] sm:$0xff]  ;;  %v702_v37 = vld [vmem:[%s1702_s28 + $0xfa0] sm:$0xff]  ;;  %v295_v20 = vld [vmem:[%s1702_s28 + $0x2e8] sm:$0xff] }
  0x86   : > { %958 = vmatpush.msrb.mxu0 %v608_v26  ;;  %977 = vmatpush.msrb.mxu1 %v642_v27  ;;  %v604_v34 = vld [vmem:[%s1702_s28 + $0xc90] sm:$0xff]  ;;  %v602_v38 = vld [vmem:[%s1702_s28 + $0xc80] sm:$0xff]  ;;  %v329_v21 = vld [vmem:[%s1702_s28 + $0x3f8] sm:$0xff] }
  0x87   : > { %998 = vmatpush.msrb.mxu2 %v672_v28  ;;  %1017 = vmatpush.msrb.mxu3 %v706_v29  ;;  %v668_v36 = vld [vmem:[%s1702_s28 + $0xe90] sm:$0xff]  ;;  %v666_v40 = vld [vmem:[%s1702_s28 + $0xe80] sm:$0xff]  ;;  %v229_v22 = vld [vmem:[%s1702_s28 + $0xd8] sm:$0xff] }
  0x88   : > { %959 = vmatpush.msrb.mxu0 %v606_v30  ;;  %978 = vmatpush.msrb.mxu1 %v640_v31  ;;  %v636_v39 = vld [vmem:[%s1702_s28 + $0xd90] sm:$0xff]  ;;  %v634_v43 = vld [vmem:[%s1702_s28 + $0xd80] sm:$0xff]  ;;  %v263_v23 = vld [vmem:[%s1702_s28 + $0x1e8] sm:$0xff] }
  0x89   : > { %999 = vmatpush.msrb.mxu2 %v670_v32  ;;  %1018 = vmatpush.msrb.mxu3 %v704_v33  ;;  %v700_v41 = vld [vmem:[%s1702_s28 + $0xf90] sm:$0xff]  ;;  %v698_v45 = vld [vmem:[%s1702_s28 + $0xf80] sm:$0xff]  ;;  %v293_v24 = vld [vmem:[%s1702_s28 + $0x2d8] sm:$0xff] }
  0x8a   : > { %960 = vmatpush.msrb.mxu0 %v604_v34  ;;  %979 = vmatpush.msrb.mxu1 %v638_v35  ;;  %v600_v42 = vld [vmem:[%s1702_s28 + $0xc70] sm:$0xff]  ;;  %v598_v46 = vld [vmem:[%s1702_s28 + $0xc60] sm:$0xff]  ;;  %v327_v25 = vld [vmem:[%s1702_s28 + $0x3e8] sm:$0xff] }
  0x8b   : > { %1000 = vmatpush.msrb.mxu2 %v668_v36  ;;  %1019 = vmatpush.msrb.mxu3 %v702_v37  ;;  %v664_v44 = vld [vmem:[%s1702_s28 + $0xe70] sm:$0xff]  ;;  %v662_v48 = vld [vmem:[%s1702_s28 + $0xe60] sm:$0xff]  ;;  %v227_v26 = vld [vmem:[%s1702_s28 + $0xc8] sm:$0xff] }
  0x8c   : > { %961 = vmatpush.msrb.mxu0 %v602_v38  ;;  %980 = vmatpush.msrb.mxu1 %v636_v39  ;;  %v632_v47 = vld [vmem:[%s1702_s28 + $0xd70] sm:$0xff]  ;;  %v630_v51 = vld [vmem:[%s1702_s28 + $0xd60] sm:$0xff]  ;;  %v261_v27 = vld [vmem:[%s1702_s28 + $0x1d8] sm:$0xff] }
  0x8d   : > { %1001 = vmatpush.msrb.mxu2 %v666_v40  ;;  %1020 = vmatpush.msrb.mxu3 %v700_v41  ;;  %v696_v49 = vld [vmem:[%s1702_s28 + $0xf70] sm:$0xff]  ;;  %v694_v53 = vld [vmem:[%s1702_s28 + $0xf60] sm:$0xff]  ;;  %v291_v28 = vld [vmem:[%s1702_s28 + $0x2c8] sm:$0xff] }
  0x8e   : > { %962 = vmatpush.msrb.mxu0 %v600_v42  ;;  %981 = vmatpush.msrb.mxu1 %v634_v43  ;;  %v596_v50 = vld [vmem:[%s1702_s28 + $0xc50] sm:$0xff]  ;;  %v594_v54 = vld [vmem:[%s1702_s28 + $0xc40] sm:$0xff]  ;;  %v325_v29 = vld [vmem:[%s1702_s28 + $0x3d8] sm:$0xff] }
  0x8f   : > { %1002 = vmatpush.msrb.mxu2 %v664_v44  ;;  %1021 = vmatpush.msrb.mxu3 %v698_v45  ;;  %v660_v52 = vld [vmem:[%s1702_s28 + $0xe50] sm:$0xff]  ;;  %v658_v56 = vld [vmem:[%s1702_s28 + $0xe40] sm:$0xff]  ;;  %v225_v30 = vld [vmem:[%s1702_s28 + $0xb8] sm:$0xff] }
  0x90   : > { %963 = vmatpush.msrb.mxu0 %v598_v46  ;;  %982 = vmatpush.msrb.mxu1 %v632_v47  ;;  %v628_v55 = vld [vmem:[%s1702_s28 + $0xd50] sm:$0xff]  ;;  %v626_v59 = vld [vmem:[%s1702_s28 + $0xd40] sm:$0xff]  ;;  %v259_v31 = vld [vmem:[%s1702_s28 + $0x1c8] sm:$0xff] }
  0x91   : > { %1003 = vmatpush.msrb.mxu2 %v662_v48  ;;  %1022 = vmatpush.msrb.mxu3 %v696_v49  ;;  %v692_v57 = vld [vmem:[%s1702_s28 + $0xf50] sm:$0xff]  ;;  %v690_v61 = vld [vmem:[%s1702_s28 + $0xf40] sm:$0xff]  ;;  %v289_v32 = vld [vmem:[%s1702_s28 + $0x2b8] sm:$0xff] }
  0x92   : > { %964 = vmatpush.msrb.mxu0 %v596_v50  ;;  %983 = vmatpush.msrb.mxu1 %v630_v51  ;;  %v592_v58 = vld [vmem:[%s1702_s28 + $0xc30] sm:$0xff]  ;;  %v590_v62 = vld [vmem:[%s1702_s28 + $0xc20] sm:$0xff]  ;;  %v323_v33 = vld [vmem:[%s1702_s28 + $0x3c8] sm:$0xff] }
  0x93   : > { %1004 = vmatpush.msrb.mxu2 %v660_v52  ;;  %1023 = vmatpush.msrb.mxu3 %v694_v53  ;;  %v656_v60 = vld [vmem:[%s1702_s28 + $0xe30] sm:$0xff]  ;;  %v654_v0 = vld [vmem:[%s1702_s28 + $0xe20] sm:$0xff]  ;;  %v223_v34 = vld [vmem:[%s1702_s28 + $0xa8] sm:$0xff] }
  0x94   : > { %965 = vmatpush.msrb.mxu0 %v594_v54  ;;  %984 = vmatpush.msrb.mxu1 %v628_v55  ;;  %v624_v63 = vld [vmem:[%s1702_s28 + $0xd30] sm:$0xff]  ;;  %v622_v3 = vld [vmem:[%s1702_s28 + $0xd20] sm:$0xff]  ;;  %v257_v35 = vld [vmem:[%s1702_s28 + $0x1b8] sm:$0xff] }
  0x95   : > { %1005 = vmatpush.msrb.mxu2 %v658_v56  ;;  %1024 = vmatpush.msrb.mxu3 %v692_v57  ;;  %v688_v1 = vld [vmem:[%s1702_s28 + $0xf30] sm:$0xff]  ;;  %v686_v5 = vld [vmem:[%s1702_s28 + $0xf20] sm:$0xff]  ;;  %v287_v36 = vld [vmem:[%s1702_s28 + $0x2a8] sm:$0xff] }
  0x96   : > { %966 = vmatpush.msrb.mxu0 %v592_v58  ;;  %985 = vmatpush.msrb.mxu1 %v626_v59  ;;  %v588_v2 = vld [vmem:[%s1702_s28 + $0xc10] sm:$0xff]  ;;  %v586_v6 = vld [vmem:[%s1702_s28 + $0xc00] sm:$0xff]  ;;  %v321_v37 = vld [vmem:[%s1702_s28 + $0x3b8] sm:$0xff] }
  0x97   : > { %1006 = vmatpush.msrb.mxu2 %v656_v60  ;;  %1025 = vmatpush.msrb.mxu3 %v690_v61  ;;  %v652_v4 = vld [vmem:[%s1702_s28 + $0xe10] sm:$0xff]  ;;  %v650_v8 = vld [vmem:[%s1702_s28 + $0xe00] sm:$0xff]  ;;  %v221_v38 = vld [vmem:[%s1702_s28 + $0x98] sm:$0xff] }
  0x98   : > { %967 = vmatpush.msrb.mxu0 %v590_v62  ;;  %986 = vmatpush.msrb.mxu1 %v624_v63  ;;  %v620_v7 = vld [vmem:[%s1702_s28 + $0xd10] sm:$0xff]  ;;  %v198_v10 = vld [vmem:[%s2351_s1 + $0x60] sm:$0xff]  ;;  %v255_v39 = vld [vmem:[%s1702_s28 + $0x1a8] sm:$0xff] }
  0x99   : > { %1007 = vmatpush.msrb.mxu2 %v654_v0  ;;  %1026 = vmatpush.msrb.mxu3 %v688_v1  ;;  %v684_v9 = vld [vmem:[%s1702_s28 + $0xf10] sm:$0xff]  ;;  %v618_v14 = vld [vmem:[%s1702_s28 + $0xd00] sm:$0xff]  ;;  %v285_v40 = vld [vmem:[%s1702_s28 + $0x298] sm:$0xff] }
  0x9a   : > { %968 = vmatpush.msrb.mxu0 %v588_v2  ;;  %987 = vmatpush.msrb.mxu1 %v622_v3  ;;  %v200_v11 = vld [vmem:[%s2351_s1 + $0x70] sm:$0xff]  ;;  %v682_v15 = vld [vmem:[%s1702_s28 + $0xf00] sm:$0xff]  ;;  %v319_v41 = vld [vmem:[%s1702_s28 + $0x3a8] sm:$0xff] }
  0x9b   : > { %1008 = vmatpush.msrb.mxu2 %v652_v4  ;;  %1027 = vmatpush.msrb.mxu3 %v686_v5  ;;  %v219_v42 = vld [vmem:[%s1702_s28 + $0x88] sm:$0xff]  ;;  %v253_v43 = vld [vmem:[%s1702_s28 + $0x198] sm:$0xff] }
  0x9c   : > { %969 = vmatpush.msrb.mxu0 %v586_v6  ;;  %988 = vmatpush.msrb.mxu1 %v620_v7  ;;  %v283_v44 = vld [vmem:[%s1702_s28 + $0x288] sm:$0xff]  ;;  %v317_v45 = vld [vmem:[%s1702_s28 + $0x398] sm:$0xff] }
  0x9d   : > { %1009 = vmatpush.msrb.mxu2 %v650_v8  ;;  %1028 = vmatpush.msrb.mxu3 %v684_v9  ;;  %v217_v46 = vld [vmem:[%s1702_s28 + $0x78] sm:$0xff]  ;;  %v251_v47 = vld [vmem:[%s1702_s28 + $0x188] sm:$0xff] }
  0x9e   : > { %970 = vmatmul.f32.vlgmr.msrb.gmra.mxu0 %v198_v10  ;;  %1010 = vmatmul.f32.vlgmr.msrb.gmra.mxu2 %v200_v11  ;;  %v281_v48 = vld [vmem:[%s1702_s28 + $0x278] sm:$0xff]  ;;  %v315_v49 = vld [vmem:[%s1702_s28 + $0x388] sm:$0xff] }
  0x9f   : > { %1034 = vmatpush.msra.mxu0 %v233_v12  ;;  %1074 = vmatpush.msra.mxu2 %v297_v13  ;;  %v215_v50 = vld [vmem:[%s1702_s28 + $0x68] sm:$0xff]  ;;  %v249_v51 = vld [vmem:[%s1702_s28 + $0x178] sm:$0xff] }
  0xa0   : > { %989 = vmatpush.msrb.mxu1 %v618_v14  ;;  %1029 = vmatpush.msrb.mxu3 %v682_v15  ;;  %v279_v52 = vld [vmem:[%s1702_s28 + $0x268] sm:$0xff]  ;;  %v313_v53 = vld [vmem:[%s1702_s28 + $0x378] sm:$0xff] }
  0xa1   : > { %990 = vmatmul.f32.vlgmr.msrb.gmra.mxu1 %v199_v16  ;;  %1030 = vmatmul.f32.vlgmr.msrb.gmra.mxu3 %v201_v17  ;;  %v213_v54 = vld [vmem:[%s1702_s28 + $0x58] sm:$0xff]  ;;  %v247_v55 = vld [vmem:[%s1702_s28 + $0x168] sm:$0xff] }
  0xa2   : > { %1035 = vmatpush.msra.mxu0 %v231_v18  ;;  %1054 = vmatpush.msra.mxu1 %v265_v19  ;;  %v277_v56 = vld [vmem:[%s1702_s28 + $0x258] sm:$0xff]  ;;  %v311_v57 = vld [vmem:[%s1702_s28 + $0x368] sm:$0xff] }
  0xa3   : > { %1075 = vmatpush.msra.mxu2 %v295_v20  ;;  %1094 = vmatpush.msra.mxu3 %v329_v21  ;;  %v211_v58 = vld [vmem:[%s1702_s28 + $0x48] sm:$0xff]  ;;  %v245_v59 = vld [vmem:[%s1702_s28 + $0x158] sm:$0xff] }
  0xa4   : > { %1036 = vmatpush.msra.mxu0 %v229_v22  ;;  %1055 = vmatpush.msra.mxu1 %v263_v23  ;;  %v275_v60 = vld [vmem:[%s1702_s28 + $0x248] sm:$0xff]  ;;  %v309_v61 = vld [vmem:[%s1702_s28 + $0x358] sm:$0xff] }
  0xa5   : > { %1076 = vmatpush.msra.mxu2 %v293_v24  ;;  %1095 = vmatpush.msra.mxu3 %v327_v25  ;;  %v209_v62 = vld [vmem:[%s1702_s28 + $0x38] sm:$0xff]  ;;  %v243_v63 = vld [vmem:[%s1702_s28 + $0x148] sm:$0xff] }
  0xa6   : > { %1037 = vmatpush.msra.mxu0 %v227_v26  ;;  %1056 = vmatpush.msra.mxu1 %v261_v27  ;;  %v273_v0 = vld [vmem:[%s1702_s28 + $0x238] sm:$0xff]  ;;  %v307_v1 = vld [vmem:[%s1702_s28 + $0x348] sm:$0xff] }
  0xa7   : > { %1077 = vmatpush.msra.mxu2 %v291_v28  ;;  %1096 = vmatpush.msra.mxu3 %v325_v29  ;;  %v207_v2 = vld [vmem:[%s1702_s28 + $0x28] sm:$0xff]  ;;  %v241_v3 = vld [vmem:[%s1702_s28 + $0x138] sm:$0xff] }
  0xa8   : > { %1038 = vmatpush.msra.mxu0 %v225_v30  ;;  %1057 = vmatpush.msra.mxu1 %v259_v31  ;;  %v271_v4 = vld [vmem:[%s1702_s28 + $0x228] sm:$0xff]  ;;  %v305_v5 = vld [vmem:[%s1702_s28 + $0x338] sm:$0xff] }
  0xa9   : > { %1078 = vmatpush.msra.mxu2 %v289_v32  ;;  %1097 = vmatpush.msra.mxu3 %v323_v33  ;;  %v205_v6 = vld [vmem:[%s1702_s28 + $0x18] sm:$0xff]  ;;  %v239_v7 = vld [vmem:[%s1702_s28 + $0x128] sm:$0xff] }
  0xaa   : > { %1039 = vmatpush.msra.mxu0 %v223_v34  ;;  %1058 = vmatpush.msra.mxu1 %v257_v35  ;;  %v269_v8 = vld [vmem:[%s1702_s28 + $0x218] sm:$0xff]  ;;  %v303_v9 = vld [vmem:[%s1702_s28 + $0x328] sm:$0xff] }
  0xab   : > { %1079 = vmatpush.msra.mxu2 %v287_v36  ;;  %1098 = vmatpush.msra.mxu3 %v321_v37  ;;  %v203_v10 = vld [vmem:[%s1702_s28 + $0x8] sm:$0xff]  ;;  %v237_v11 = vld [vmem:[%s1702_s28 + $0x118] sm:$0xff] }
  0xac   : > { %1040 = vmatpush.msra.mxu0 %v221_v38  ;;  %1059 = vmatpush.msra.mxu1 %v255_v39  ;;  %v267_v12 = vld [vmem:[%s1702_s28 + $0x208] sm:$0xff]  ;;  %v301_v13 = vld [vmem:[%s1702_s28 + $0x318] sm:$0xff] }
  0xad   : > { %1080 = vmatpush.msra.mxu2 %v285_v40  ;;  %1099 = vmatpush.msra.mxu3 %v319_v41  ;;  %v361_v14 = vld [vmem:[%s1702_s28 + $0x4f8] sm:$0xff]  ;;  %v235_v16 = vld [vmem:[%s1702_s28 + $0x108] sm:$0xff] }
  0xae   : > { %1041 = vmatpush.msra.mxu0 %v219_v42  ;;  %1060 = vmatpush.msra.mxu1 %v253_v43  ;;  %v425_v15 = vld [vmem:[%s1702_s28 + $0x6f8] sm:$0xff]  ;;  %v299_v17 = vld [vmem:[%s1702_s28 + $0x308] sm:$0xff] }
  0xaf   : > { %1081 = vmatpush.msra.mxu2 %v283_v44  ;;  %1100 = vmatpush.msra.mxu3 %v317_v45  ;;  %v359_v18 = vld [vmem:[%s1702_s28 + $0x4e8] sm:$0xff]  ;;  %v393_v19 = vld [vmem:[%s1702_s28 + $0x5f8] sm:$0xff] }
  0xb0   : > { %1042 = vmatpush.msra.mxu0 %v217_v46  ;;  %1061 = vmatpush.msra.mxu1 %v251_v47  ;;  %v423_v20 = vld [vmem:[%s1702_s28 + $0x6e8] sm:$0xff]  ;;  %v457_v21 = vld [vmem:[%s1702_s28 + $0x7f8] sm:$0xff] }
  0xb1   : > { %1082 = vmatpush.msra.mxu2 %v281_v48  ;;  %1101 = vmatpush.msra.mxu3 %v315_v49  ;;  %v357_v22 = vld [vmem:[%s1702_s28 + $0x4d8] sm:$0xff]  ;;  %v391_v23 = vld [vmem:[%s1702_s28 + $0x5e8] sm:$0xff] }
  0xb2   : > { %1043 = vmatpush.msra.mxu0 %v215_v50  ;;  %1062 = vmatpush.msra.mxu1 %v249_v51  ;;  %v421_v24 = vld [vmem:[%s1702_s28 + $0x6d8] sm:$0xff]  ;;  %v455_v25 = vld [vmem:[%s1702_s28 + $0x7e8] sm:$0xff] }
  0xb3   : > { %1083 = vmatpush.msra.mxu2 %v279_v52  ;;  %1102 = vmatpush.msra.mxu3 %v313_v53  ;;  %v355_v26 = vld [vmem:[%s1702_s28 + $0x4c8] sm:$0xff]  ;;  %v389_v27 = vld [vmem:[%s1702_s28 + $0x5d8] sm:$0xff] }
  0xb4   : > { %1044 = vmatpush.msra.mxu0 %v213_v54  ;;  %1063 = vmatpush.msra.mxu1 %v247_v55  ;;  %v419_v28 = vld [vmem:[%s1702_s28 + $0x6c8] sm:$0xff]  ;;  %v453_v29 = vld [vmem:[%s1702_s28 + $0x7d8] sm:$0xff] }
  0xb5   : > { %1084 = vmatpush.msra.mxu2 %v277_v56  ;;  %1103 = vmatpush.msra.mxu3 %v311_v57  ;;  %v353_v30 = vld [vmem:[%s1702_s28 + $0x4b8] sm:$0xff]  ;;  %v387_v31 = vld [vmem:[%s1702_s28 + $0x5c8] sm:$0xff] }
  0xb6   : > { %1045 = vmatpush.msra.mxu0 %v211_v58  ;;  %1064 = vmatpush.msra.mxu1 %v245_v59  ;;  %v417_v32 = vld [vmem:[%s1702_s28 + $0x6b8] sm:$0xff]  ;;  %v451_v33 = vld [vmem:[%s1702_s28 + $0x7c8] sm:$0xff] }
  0xb7   : > { %1085 = vmatpush.msra.mxu2 %v275_v60  ;;  %1104 = vmatpush.msra.mxu3 %v309_v61  ;;  %v351_v34 = vld [vmem:[%s1702_s28 + $0x4a8] sm:$0xff]  ;;  %v385_v35 = vld [vmem:[%s1702_s28 + $0x5b8] sm:$0xff] }
  0xb8   : > { %1046 = vmatpush.msra.mxu0 %v209_v62  ;;  %1065 = vmatpush.msra.mxu1 %v243_v63  ;;  %v415_v36 = vld [vmem:[%s1702_s28 + $0x6a8] sm:$0xff]  ;;  %v449_v37 = vld [vmem:[%s1702_s28 + $0x7b8] sm:$0xff] }
  0xb9   : > { %1086 = vmatpush.msra.mxu2 %v273_v0  ;;  %1105 = vmatpush.msra.mxu3 %v307_v1  ;;  %v349_v38 = vld [vmem:[%s1702_s28 + $0x498] sm:$0xff]  ;;  %v383_v39 = vld [vmem:[%s1702_s28 + $0x5a8] sm:$0xff] }
  0xba   : > { %1047 = vmatpush.msra.mxu0 %v207_v2  ;;  %1066 = vmatpush.msra.mxu1 %v241_v3  ;;  %v413_v40 = vld [vmem:[%s1702_s28 + $0x698] sm:$0xff]  ;;  %v447_v41 = vld [vmem:[%s1702_s28 + $0x7a8] sm:$0xff] }
  0xbb   : > { %1087 = vmatpush.msra.mxu2 %v271_v4  ;;  %1106 = vmatpush.msra.mxu3 %v305_v5  ;;  %v347_v42 = vld [vmem:[%s1702_s28 + $0x488] sm:$0xff]  ;;  %v381_v43 = vld [vmem:[%s1702_s28 + $0x598] sm:$0xff] }
  0xbc   : > { %1048 = vmatpush.msra.mxu0 %v205_v6  ;;  %1067 = vmatpush.msra.mxu1 %v239_v7  ;;  %v411_v44 = vld [vmem:[%s1702_s28 + $0x688] sm:$0xff]  ;;  %v445_v45 = vld [vmem:[%s1702_s28 + $0x798] sm:$0xff] }
  0xbd   : > { %1088 = vmatpush.msra.mxu2 %v269_v8  ;;  %1107 = vmatpush.msra.mxu3 %v303_v9  ;;  %v345_v46 = vld [vmem:[%s1702_s28 + $0x478] sm:$0xff]  ;;  %v379_v47 = vld [vmem:[%s1702_s28 + $0x588] sm:$0xff] }
  0xbe   : > { %1049 = vmatpush.msra.mxu0 %v203_v10  ;;  %1068 = vmatpush.msra.mxu1 %v237_v11  ;;  %v409_v48 = vld [vmem:[%s1702_s28 + $0x678] sm:$0xff]  ;;  %v443_v49 = vld [vmem:[%s1702_s28 + $0x788] sm:$0xff] }
  0xbf   : > { %1089 = vmatpush.msra.mxu2 %v267_v12  ;;  %1108 = vmatpush.msra.mxu3 %v301_v13  ;;  %v343_v50 = vld [vmem:[%s1702_s28 + $0x468] sm:$0xff]  ;;  %v377_v51 = vld [vmem:[%s1702_s28 + $0x578] sm:$0xff] }
  0xc0   : > { %1114 = vmatpush.msrb.mxu0 %v361_v14  ;;  %1069 = vmatpush.msra.mxu1 %v235_v16  ;;  %v407_v52 = vld [vmem:[%s1702_s28 + $0x668] sm:$0xff]  ;;  %v441_v53 = vld [vmem:[%s1702_s28 + $0x778] sm:$0xff]  ;;  %v1545_v14 = vld [vmem:[%s2351_s1 + $0x10] sm:$0xff] }
  0xc1   : > { %1154 = vmatpush.msrb.mxu2 %v425_v15  ;;  %1109 = vmatpush.msra.mxu3 %v299_v17  ;;  %v341_v54 = vld [vmem:[%s1702_s28 + $0x458] sm:$0xff]  ;;  %v375_v55 = vld [vmem:[%s1702_s28 + $0x568] sm:$0xff] }
  0xc2   : > { %1115 = vmatpush.msrb.mxu0 %v359_v18  ;;  %1134 = vmatpush.msrb.mxu1 %v393_v19  ;;  %v405_v56 = vld [vmem:[%s1702_s28 + $0x658] sm:$0xff]  ;;  %v439_v57 = vld [vmem:[%s1702_s28 + $0x768] sm:$0xff]  ;;  %v1546_v18 = vld [vmem:[%s2351_s1] sm:$0xff] }
  0xc3   : > { %1155 = vmatpush.msrb.mxu2 %v423_v20  ;;  %1174 = vmatpush.msrb.mxu3 %v457_v21  ;;  %v339_v58 = vld [vmem:[%s1702_s28 + $0x448] sm:$0xff]  ;;  %v373_v59 = vld [vmem:[%s1702_s28 + $0x558] sm:$0xff] }
  0xc4   : > { %1116 = vmatpush.msrb.mxu0 %v357_v22  ;;  %1135 = vmatpush.msrb.mxu1 %v391_v23  ;;  %v403_v60 = vld [vmem:[%s1702_s28 + $0x648] sm:$0xff]  ;;  %v437_v61 = vld [vmem:[%s1702_s28 + $0x758] sm:$0xff] }
  0xc5   : > { %1156 = vmatpush.msrb.mxu2 %v421_v24  ;;  %1175 = vmatpush.msrb.mxu3 %v455_v25  ;;  %v337_v62 = vld [vmem:[%s1702_s28 + $0x438] sm:$0xff]  ;;  %v371_v63 = vld [vmem:[%s1702_s28 + $0x548] sm:$0xff] }
  0xc6   : > { %1117 = vmatpush.msrb.mxu0 %v355_v26  ;;  %1136 = vmatpush.msrb.mxu1 %v389_v27  ;;  %v401_v0 = vld [vmem:[%s1702_s28 + $0x638] sm:$0xff]  ;;  %v435_v1 = vld [vmem:[%s1702_s28 + $0x748] sm:$0xff] }
  0xc7   : > { %1157 = vmatpush.msrb.mxu2 %v419_v28  ;;  %1176 = vmatpush.msrb.mxu3 %v453_v29  ;;  %v335_v2 = vld [vmem:[%s1702_s28 + $0x428] sm:$0xff]  ;;  %v369_v3 = vld [vmem:[%s1702_s28 + $0x538] sm:$0xff] }
  0xc8   : > { %1118 = vmatpush.msrb.mxu0 %v353_v30  ;;  %1137 = vmatpush.msrb.mxu1 %v387_v31  ;;  %v399_v4 = vld [vmem:[%s1702_s28 + $0x628] sm:$0xff]  ;;  %v433_v5 = vld [vmem:[%s1702_s28 + $0x738] sm:$0xff] }
  0xc9   : > { %1158 = vmatpush.msrb.mxu2 %v417_v32  ;;  %1177 = vmatpush.msrb.mxu3 %v451_v33  ;;  %v333_v6 = vld [vmem:[%s1702_s28 + $0x418] sm:$0xff]  ;;  %v367_v7 = vld [vmem:[%s1702_s28 + $0x528] sm:$0xff] }
  0xca   : > { %1119 = vmatpush.msrb.mxu0 %v351_v34  ;;  %1138 = vmatpush.msrb.mxu1 %v385_v35  ;;  %v397_v8 = vld [vmem:[%s1702_s28 + $0x618] sm:$0xff]  ;;  %v431_v9 = vld [vmem:[%s1702_s28 + $0x728] sm:$0xff]  ;;  %v1549_v34 = vld [vmem:[%s2351_s1 + $0x30] sm:$0xff] }
  0xcb   : > { %1159 = vmatpush.msrb.mxu2 %v415_v36  ;;  %1178 = vmatpush.msrb.mxu3 %v449_v37  ;;  %v331_v10 = vld [vmem:[%s1702_s28 + $0x408] sm:$0xff]  ;;  %v365_v11 = vld [vmem:[%s1702_s28 + $0x518] sm:$0xff] }
  0xcc   : > { %1120 = vmatpush.msrb.mxu0 %v349_v38  ;;  %1139 = vmatpush.msrb.mxu1 %v383_v39  ;;  %v395_v12 = vld [vmem:[%s1702_s28 + $0x608] sm:$0xff]  ;;  %v429_v13 = vld [vmem:[%s1702_s28 + $0x718] sm:$0xff]  ;;  %v1550_v38 = vld [vmem:[%s2351_s1 + $0x20] sm:$0xff] }
  0xcd   : > { %1160 = vmatpush.msrb.mxu2 %v413_v40  ;;  %1179 = vmatpush.msrb.mxu3 %v447_v41  ;;  %v489_v15 = vld [vmem:[%s1702_s28 + $0x8f8] sm:$0xff]  ;;  %v363_v17 = vld [vmem:[%s1702_s28 + $0x508] sm:$0xff] }
  0xce   : > { %1121 = vmatpush.msrb.mxu0 %v347_v42  ;;  %1140 = vmatpush.msrb.mxu1 %v381_v43  ;;  %v553_v16 = vld [vmem:[%s1702_s28 + $0xaf8] sm:$0xff]  ;;  %v427_v19 = vld [vmem:[%s1702_s28 + $0x708] sm:$0xff] }
  0xcf   : > { %1161 = vmatpush.msrb.mxu2 %v411_v44  ;;  %1180 = vmatpush.msrb.mxu3 %v445_v45  ;;  %v1547_v20 = vld [vmem:[%s2351_s1 + $0x18] sm:$0xff]  ;;  %v487_v21 = vld [vmem:[%s1702_s28 + $0x8e8] sm:$0xff] }
  0xd0   : > { %1122 = vmatpush.msrb.mxu0 %v345_v46  ;;  %1141 = vmatpush.msrb.mxu1 %v379_v47  ;;  %v521_v22 = vld [vmem:[%s1702_s28 + $0x9f8] sm:$0xff]  ;;  %v551_v23 = vld [vmem:[%s1702_s28 + $0xae8] sm:$0xff] }
  0xd1   : > { %1162 = vmatpush.msrb.mxu2 %v409_v48  ;;  %1181 = vmatpush.msrb.mxu3 %v443_v49  ;;  %v585_v24 = vld [vmem:[%s1702_s28 + $0xbf8] sm:$0xff]  ;;  %v1548_v25 = vld [vmem:[%s2351_s1 + $0x8] sm:$0xff] }
  0xd2   : > { %1123 = vmatpush.msrb.mxu0 %v343_v50  ;;  %1142 = vmatpush.msrb.mxu1 %v377_v51  ;;  %v485_v26 = vld [vmem:[%s1702_s28 + $0x8d8] sm:$0xff]  ;;  %v519_v27 = vld [vmem:[%s1702_s28 + $0x9e8] sm:$0xff] }
  0xd3   : > { %1163 = vmatpush.msrb.mxu2 %v407_v52  ;;  %1182 = vmatpush.msrb.mxu3 %v441_v53  ;;  %v549_v28 = vld [vmem:[%s1702_s28 + $0xad8] sm:$0xff]  ;;  %v583_v29 = vld [vmem:[%s1702_s28 + $0xbe8] sm:$0xff] }
  0xd4   : > { %1124 = vmatpush.msrb.mxu0 %v341_v54  ;;  %1143 = vmatpush.msrb.mxu1 %v375_v55  ;;  %v483_v30 = vld [vmem:[%s1702_s28 + $0x8c8] sm:$0xff]  ;;  %v517_v31 = vld [vmem:[%s1702_s28 + $0x9d8] sm:$0xff] }
  0xd5   : > { %1164 = vmatpush.msrb.mxu2 %v405_v56  ;;  %1183 = vmatpush.msrb.mxu3 %v439_v57  ;;  %v547_v32 = vld [vmem:[%s1702_s28 + $0xac8] sm:$0xff]  ;;  %v581_v33 = vld [vmem:[%s1702_s28 + $0xbd8] sm:$0xff] }
  0xd6   : > { %1125 = vmatpush.msrb.mxu0 %v339_v58  ;;  %1144 = vmatpush.msrb.mxu1 %v373_v59  ;;  %v481_v35 = vld [vmem:[%s1702_s28 + $0x8b8] sm:$0xff]  ;;  %v515_v36 = vld [vmem:[%s1702_s28 + $0x9c8] sm:$0xff] }
  0xd7   : > { %1165 = vmatpush.msrb.mxu2 %v403_v60  ;;  %1184 = vmatpush.msrb.mxu3 %v437_v61  ;;  %v545_v37 = vld [vmem:[%s1702_s28 + $0xab8] sm:$0xff]  ;;  %v579_v39 = vld [vmem:[%s1702_s28 + $0xbc8] sm:$0xff] }
  0xd8   : > { %1126 = vmatpush.msrb.mxu0 %v337_v62  ;;  %1145 = vmatpush.msrb.mxu1 %v371_v63  ;;  %v1551_v40 = vld [vmem:[%s2351_s1 + $0x38] sm:$0xff]  ;;  %v479_v41 = vld [vmem:[%s1702_s28 + $0x8a8] sm:$0xff] }
  0xd9   : > { %1166 = vmatpush.msrb.mxu2 %v401_v0  ;;  %1185 = vmatpush.msrb.mxu3 %v435_v1  ;;  %v513_v42 = vld [vmem:[%s1702_s28 + $0x9b8] sm:$0xff]  ;;  %v543_v43 = vld [vmem:[%s1702_s28 + $0xaa8] sm:$0xff] }
  0xda   : > { %1127 = vmatpush.msrb.mxu0 %v335_v2  ;;  %1146 = vmatpush.msrb.mxu1 %v369_v3  ;;  %v577_v44 = vld [vmem:[%s1702_s28 + $0xbb8] sm:$0xff]  ;;  %v1552_v45 = vld [vmem:[%s2351_s1 + $0x28] sm:$0xff] }
  0xdb   : > { %1167 = vmatpush.msrb.mxu2 %v399_v4  ;;  %1186 = vmatpush.msrb.mxu3 %v433_v5  ;;  %v477_v46 = vld [vmem:[%s1702_s28 + $0x898] sm:$0xff]  ;;  %v511_v47 = vld [vmem:[%s1702_s28 + $0x9a8] sm:$0xff] }
  0xdc   : > { %1128 = vmatpush.msrb.mxu0 %v333_v6  ;;  %1147 = vmatpush.msrb.mxu1 %v367_v7  ;;  %v541_v48 = vld [vmem:[%s1702_s28 + $0xa98] sm:$0xff]  ;;  %v575_v49 = vld [vmem:[%s1702_s28 + $0xba8] sm:$0xff] }
  0xdd   : > { %1168 = vmatpush.msrb.mxu2 %v397_v8  ;;  %1187 = vmatpush.msrb.mxu3 %v431_v9  ;;  %v475_v50 = vld [vmem:[%s1702_s28 + $0x888] sm:$0xff]  ;;  %v509_v51 = vld [vmem:[%s1702_s28 + $0x998] sm:$0xff] }
  0xde   : > { %1090 = vmatmul.f32.vlgmr.msra.gmra.mxu2 %v1545_v14  ;;  %1129 = vmatpush.msrb.mxu0 %v331_v10  ;;  %v539_v52 = vld [vmem:[%s1702_s28 + $0xa88] sm:$0xff]  ;;  %v573_v53 = vld [vmem:[%s1702_s28 + $0xb98] sm:$0xff] }
  0xdf   : > { %1148 = vmatpush.msrb.mxu1 %v365_v11  ;;  %1169 = vmatpush.msrb.mxu2 %v395_v12  ;;  %v473_v54 = vld [vmem:[%s1702_s28 + $0x878] sm:$0xff]  ;;  %v507_v55 = vld [vmem:[%s1702_s28 + $0x988] sm:$0xff] }
  0xe0   : > { %1188 = vmatpush.msrb.mxu3 %v429_v13  ;;  %1050 = vmatmul.f32.vlgmr.msra.gmra.mxu0 %v1546_v18  ;;  %v537_v56 = vld [vmem:[%s1702_s28 + $0xa78] sm:$0xff]  ;;  %v571_v57 = vld [vmem:[%s1702_s28 + $0xb88] sm:$0xff] }
  0xe1   : > { %1110 = vmatmul.f32.vlgmr.msra.gmra.mxu3 %v1547_v20  ;;  %1194 = vmatpush.msra.mxu0 %v489_v15  ;;  %v471_v58 = vld [vmem:[%s1702_s28 + $0x868] sm:$0xff]  ;;  %v505_v59 = vld [vmem:[%s1702_s28 + $0x978] sm:$0xff] }
  0xe2   : > { %1234 = vmatpush.msra.mxu2 %v553_v16  ;;  %1149 = vmatpush.msrb.mxu1 %v363_v17  ;;  %v535_v60 = vld [vmem:[%s1702_s28 + $0xa68] sm:$0xff]  ;;  %v569_v61 = vld [vmem:[%s1702_s28 + $0xb78] sm:$0xff] }
  0xe3   : > { %1189 = vmatpush.msrb.mxu3 %v427_v19  ;;  %1070 = vmatmul.f32.vlgmr.msra.gmra.mxu1 %v1548_v25  ;;  %v469_v62 = vld [vmem:[%s1702_s28 + $0x858] sm:$0xff]  ;;  %v503_v63 = vld [vmem:[%s1702_s28 + $0x968] sm:$0xff] }
  0xe4   : > { %1195 = vmatpush.msra.mxu0 %v487_v21  ;;  %1214 = vmatpush.msra.mxu1 %v521_v22  ;;  %v533_v0 = vld [vmem:[%s1702_s28 + $0xa58] sm:$0xff]  ;;  %v567_v1 = vld [vmem:[%s1702_s28 + $0xb68] sm:$0xff] }
  0xe5   : > { %1235 = vmatpush.msra.mxu2 %v551_v23  ;;  %1254 = vmatpush.msra.mxu3 %v585_v24  ;;  %v467_v2 = vld [vmem:[%s1702_s28 + $0x848] sm:$0xff]  ;;  %v501_v3 = vld [vmem:[%s1702_s28 + $0x958] sm:$0xff] }
  0xe6   : > { %1196 = vmatpush.msra.mxu0 %v485_v26  ;;  %1215 = vmatpush.msra.mxu1 %v519_v27  ;;  %v531_v4 = vld [vmem:[%s1702_s28 + $0xa48] sm:$0xff]  ;;  %v565_v5 = vld [vmem:[%s1702_s28 + $0xb58] sm:$0xff]  ;;  %v1553_v26 = vld [vmem:[%s2351_s1 + $0x40] sm:$0xff] }
  0xe7   : > { %1236 = vmatpush.msra.mxu2 %v549_v28  ;;  %1255 = vmatpush.msra.mxu3 %v583_v29  ;;  %v465_v6 = vld [vmem:[%s1702_s28 + $0x838] sm:$0xff]  ;;  %v499_v7 = vld [vmem:[%s1702_s28 + $0x948] sm:$0xff]  ;;  %v1554_v27 = vld [vmem:[%s2351_s1 + $0x50] sm:$0xff] }
  0xe8   : > { %1170 = vmatmul.f32.vlgmr.msrb.gmra.mxu2 %v1549_v34  ;;  %1197 = vmatpush.msra.mxu0 %v483_v30  ;;  %v529_v8 = vld [vmem:[%s1702_s28 + $0xa38] sm:$0xff]  ;;  %v563_v9 = vld [vmem:[%s1702_s28 + $0xb48] sm:$0xff] }
  0xe9   : > { %1216 = vmatpush.msra.mxu1 %v517_v31  ;;  %1237 = vmatpush.msra.mxu2 %v547_v32  ;;  %v463_v10 = vld [vmem:[%s1702_s28 + $0x828] sm:$0xff]  ;;  %v497_v11 = vld [vmem:[%s1702_s28 + $0x938] sm:$0xff] }
  0xea   : > { %1256 = vmatpush.msra.mxu3 %v581_v33  ;;  %1130 = vmatmul.f32.vlgmr.msrb.gmra.mxu0 %v1550_v38  ;;  %v527_v12 = vld [vmem:[%s1702_s28 + $0xa28] sm:$0xff]  ;;  %v561_v13 = vld [vmem:[%s1702_s28 + $0xb38] sm:$0xff] }
  0xeb   : > { %1190 = vmatmul.f32.vlgmr.msrb.gmra.mxu3 %v1551_v40  ;;  %1198 = vmatpush.msra.mxu0 %v481_v35  ;;  %v461_v14 = vld [vmem:[%s1702_s28 + $0x818] sm:$0xff]  ;;  %v495_v15 = vld [vmem:[%s1702_s28 + $0x928] sm:$0xff] }
  0xec   : > { %1217 = vmatpush.msra.mxu1 %v515_v36  ;;  %1238 = vmatpush.msra.mxu2 %v545_v37  ;;  %v525_v16 = vld [vmem:[%s1702_s28 + $0xa18] sm:$0xff]  ;;  %v559_v17 = vld [vmem:[%s1702_s28 + $0xb28] sm:$0xff] }
  0xed   : > { %1257 = vmatpush.msra.mxu3 %v579_v39  ;;  %1150 = vmatmul.f32.vlgmr.msrb.gmra.mxu1 %v1552_v45  ;;  %v459_v18 = vld [vmem:[%s1702_s28 + $0x808] sm:$0xff]  ;;  %v493_v19 = vld [vmem:[%s1702_s28 + $0x918] sm:$0xff] }
  0xee   : > { %1199 = vmatpush.msra.mxu0 %v479_v41  ;;  %1218 = vmatpush.msra.mxu1 %v513_v42  ;;  %v523_v20 = vld [vmem:[%s1702_s28 + $0xa08] sm:$0xff]  ;;  %v557_v21 = vld [vmem:[%s1702_s28 + $0xb18] sm:$0xff] }
  0xef   : > { %1239 = vmatpush.msra.mxu2 %v543_v43  ;;  %1258 = vmatpush.msra.mxu3 %v577_v44  ;;  %v617_v22 = vld [vmem:[%s1702_s28 + $0xcf8] sm:$0xff]  ;;  %v491_v24 = vld [vmem:[%s1702_s28 + $0x908] sm:$0xff] }
  0xf0   : > { %1200 = vmatpush.msra.mxu0 %v477_v46  ;;  %1219 = vmatpush.msra.mxu1 %v511_v47  ;;  %v681_v23 = vld [vmem:[%s1702_s28 + $0xef8] sm:$0xff]  ;;  %v555_v25 = vld [vmem:[%s1702_s28 + $0xb08] sm:$0xff] }
  0xf1   : > { %1240 = vmatpush.msra.mxu2 %v541_v48  ;;  %1259 = vmatpush.msra.mxu3 %v575_v49  ;;  %v615_v28 = vld [vmem:[%s1702_s28 + $0xce8] sm:$0xff]  ;;  %v649_v29 = vld [vmem:[%s1702_s28 + $0xdf8] sm:$0xff] }
  0xf2   : > { %1201 = vmatpush.msra.mxu0 %v475_v50  ;;  %1220 = vmatpush.msra.mxu1 %v509_v51  ;;  %v679_v30 = vld [vmem:[%s1702_s28 + $0xee8] sm:$0xff]  ;;  %v713_v31 = vld [vmem:[%s1702_s28 + $0xff8] sm:$0xff] }
  0xf3   : > { %1241 = vmatpush.msra.mxu2 %v539_v52  ;;  %1260 = vmatpush.msra.mxu3 %v573_v53  ;;  %v1555_v32 = vld [vmem:[%s2351_s1 + $0x48] sm:$0xff]  ;;  %v1556_v33 = vld [vmem:[%s2351_s1 + $0x58] sm:$0xff] }
  0xf4   : > { %1202 = vmatpush.msra.mxu0 %v473_v54  ;;  %1221 = vmatpush.msra.mxu1 %v507_v55  ;;  %v613_v34 = vld [vmem:[%s1702_s28 + $0xcd8] sm:$0xff]  ;;  %v647_v35 = vld [vmem:[%s1702_s28 + $0xde8] sm:$0xff] }
  0xf5   : > { %1242 = vmatpush.msra.mxu2 %v537_v56  ;;  %1261 = vmatpush.msra.mxu3 %v571_v57  ;;  %v677_v36 = vld [vmem:[%s1702_s28 + $0xed8] sm:$0xff]  ;;  %v711_v37 = vld [vmem:[%s1702_s28 + $0xfe8] sm:$0xff] }
  0xf6   : > { %1203 = vmatpush.msra.mxu0 %v471_v58  ;;  %1222 = vmatpush.msra.mxu1 %v505_v59  ;;  %v611_v38 = vld [vmem:[%s1702_s28 + $0xcc8] sm:$0xff]  ;;  %v645_v39 = vld [vmem:[%s1702_s28 + $0xdd8] sm:$0xff] }
  0xf7   : > { %1243 = vmatpush.msra.mxu2 %v535_v60  ;;  %1262 = vmatpush.msra.mxu3 %v569_v61  ;;  %v675_v40 = vld [vmem:[%s1702_s28 + $0xec8] sm:$0xff]  ;;  %v709_v41 = vld [vmem:[%s1702_s28 + $0xfd8] sm:$0xff] }
  0xf8   : > { %1204 = vmatpush.msra.mxu0 %v469_v62  ;;  %1223 = vmatpush.msra.mxu1 %v503_v63  ;;  %v609_v42 = vld [vmem:[%s1702_s28 + $0xcb8] sm:$0xff]  ;;  %v643_v43 = vld [vmem:[%s1702_s28 + $0xdc8] sm:$0xff] }
  0xf9   : > { %1244 = vmatpush.msra.mxu2 %v533_v0  ;;  %1263 = vmatpush.msra.mxu3 %v567_v1  ;;  %v673_v44 = vld [vmem:[%s1702_s28 + $0xeb8] sm:$0xff]  ;;  %v707_v45 = vld [vmem:[%s1702_s28 + $0xfc8] sm:$0xff] }
  0xfa   : > { %1205 = vmatpush.msra.mxu0 %v467_v2  ;;  %1224 = vmatpush.msra.mxu1 %v501_v3  ;;  %v607_v46 = vld [vmem:[%s1702_s28 + $0xca8] sm:$0xff]  ;;  %v641_v47 = vld [vmem:[%s1702_s28 + $0xdb8] sm:$0xff] }
  0xfb   : > { %1245 = vmatpush.msra.mxu2 %v531_v4  ;;  %1264 = vmatpush.msra.mxu3 %v565_v5  ;;  %v671_v48 = vld [vmem:[%s1702_s28 + $0xea8] sm:$0xff]  ;;  %v705_v49 = vld [vmem:[%s1702_s28 + $0xfb8] sm:$0xff] }
  0xfc   : > { %1206 = vmatpush.msra.mxu0 %v465_v6  ;;  %1225 = vmatpush.msra.mxu1 %v499_v7  ;;  %v605_v50 = vld [vmem:[%s1702_s28 + $0xc98] sm:$0xff]  ;;  %v639_v51 = vld [vmem:[%s1702_s28 + $0xda8] sm:$0xff] }
  0xfd   : > { %1246 = vmatpush.msra.mxu2 %v529_v8  ;;  %1265 = vmatpush.msra.mxu3 %v563_v9  ;;  %v669_v52 = vld [vmem:[%s1702_s28 + $0xe98] sm:$0xff]  ;;  %v703_v53 = vld [vmem:[%s1702_s28 + $0xfa8] sm:$0xff] }
  0xfe   : > { %1207 = vmatpush.msra.mxu0 %v463_v10  ;;  %1226 = vmatpush.msra.mxu1 %v497_v11  ;;  %v603_v54 = vld [vmem:[%s1702_s28 + $0xc88] sm:$0xff]  ;;  %v637_v55 = vld [vmem:[%s1702_s28 + $0xd98] sm:$0xff] }
  0xff   : > { %1247 = vmatpush.msra.mxu2 %v527_v12  ;;  %1266 = vmatpush.msra.mxu3 %v561_v13  ;;  %v667_v56 = vld [vmem:[%s1702_s28 + $0xe88] sm:$0xff]  ;;  %v701_v57 = vld [vmem:[%s1702_s28 + $0xf98] sm:$0xff] }
 0x100   : > { %1208 = vmatpush.msra.mxu0 %v461_v14  ;;  %1227 = vmatpush.msra.mxu1 %v495_v15  ;;  %v601_v58 = vld [vmem:[%s1702_s28 + $0xc78] sm:$0xff]  ;;  %v635_v59 = vld [vmem:[%s1702_s28 + $0xd88] sm:$0xff] }
 0x101   : > { %1248 = vmatpush.msra.mxu2 %v525_v16  ;;  %1267 = vmatpush.msra.mxu3 %v559_v17  ;;  %v665_v60 = vld [vmem:[%s1702_s28 + $0xe78] sm:$0xff]  ;;  %v699_v61 = vld [vmem:[%s1702_s28 + $0xf88] sm:$0xff] }
 0x102   : > { %1209 = vmatpush.msra.mxu0 %v459_v18  ;;  %1228 = vmatpush.msra.mxu1 %v493_v19  ;;  %v599_v62 = vld [vmem:[%s1702_s28 + $0xc68] sm:$0xff]  ;;  %v633_v63 = vld [vmem:[%s1702_s28 + $0xd78] sm:$0xff] }
 0x103   : > { %1249 = vmatpush.msra.mxu2 %v523_v20  ;;  %1268 = vmatpush.msra.mxu3 %v557_v21  ;;  %v663_v0 = vld [vmem:[%s1702_s28 + $0xe68] sm:$0xff]  ;;  %v697_v1 = vld [vmem:[%s1702_s28 + $0xf78] sm:$0xff] }
 0x104   : > { %1210 = vmatmul.f32.vlgmr.msra.gmra.mxu0 %v1553_v26  ;;  %1250 = vmatmul.f32.vlgmr.msra.gmra.mxu2 %v1554_v27  ;;  %v597_v2 = vld [vmem:[%s1702_s28 + $0xc58] sm:$0xff]  ;;  %v631_v3 = vld [vmem:[%s1702_s28 + $0xd68] sm:$0xff] }
 0x105   : > { %1274 = vmatpush.msrb.mxu0 %v617_v22  ;;  %1314 = vmatpush.msrb.mxu2 %v681_v23  ;;  %v661_v4 = vld [vmem:[%s1702_s28 + $0xe58] sm:$0xff]  ;;  %v695_v5 = vld [vmem:[%s1702_s28 + $0xf68] sm:$0xff] }
 0x106   : > { %1229 = vmatpush.msra.mxu1 %v491_v24  ;;  %1269 = vmatpush.msra.mxu3 %v555_v25  ;;  %v595_v6 = vld [vmem:[%s1702_s28 + $0xc48] sm:$0xff]  ;;  %v629_v7 = vld [vmem:[%s1702_s28 + $0xd58] sm:$0xff] }
 0x107   : > { %1230 = vmatmul.f32.vlgmr.msra.gmra.mxu1 %v1555_v32  ;;  %1270 = vmatmul.f32.vlgmr.msra.gmra.mxu3 %v1556_v33  ;;  %v659_v8 = vld [vmem:[%s1702_s28 + $0xe48] sm:$0xff]  ;;  %v693_v9 = vld [vmem:[%s1702_s28 + $0xf58] sm:$0xff]  ;;  %v751_v32 = vpop.f32.mrf.mxu1  ;;  %v731_v33 = vpop.f32.mrf.mxu0 }
 0x108   : > { %1275 = vmatpush.msrb.mxu0 %v615_v28  ;;  %1294 = vmatpush.msrb.mxu1 %v649_v29  ;;  %v593_v10 = vld [vmem:[%s1702_s28 + $0xc38] sm:$0xff]  ;;  %v627_v11 = vld [vmem:[%s1702_s28 + $0xd48] sm:$0xff]  ;;  %v1557_v28 = vld [vmem:[%s2351_s1 + $0x60] sm:$0xff] }
 0x109   : > { %1315 = vmatpush.msrb.mxu2 %v679_v30  ;;  %1334 = vmatpush.msrb.mxu3 %v713_v31  ;;  %v657_v12 = vld [vmem:[%s1702_s28 + $0xe38] sm:$0xff]  ;;  %v691_v13 = vld [vmem:[%s1702_s28 + $0xf48] sm:$0xff]  ;;  %v1558_v29 = vld [vmem:[%s2351_s1 + $0x70] sm:$0xff] }
 0x10a   : > { %1276 = vmatpush.msrb.mxu0 %v613_v34  ;;  %1295 = vmatpush.msrb.mxu1 %v647_v35  ;;  %v591_v14 = vld [vmem:[%s1702_s28 + $0xc28] sm:$0xff]  ;;  %v625_v15 = vld [vmem:[%s1702_s28 + $0xd38] sm:$0xff]  ;;  %v771_v34 = vpop.f32.mrf.mxu2  ;;  %v791_v35 = vpop.f32.mrf.mxu3 }
 0x10b   : > { %1316 = vmatpush.msrb.mxu2 %v677_v36  ;;  %1335 = vmatpush.msrb.mxu3 %v711_v37  ;;  %v655_v16 = vld [vmem:[%s1702_s28 + $0xe28] sm:$0xff]  ;;  %v689_v17 = vld [vmem:[%s1702_s28 + $0xf38] sm:$0xff] }
 0x10c   : > { %1277 = vmatpush.msrb.mxu0 %v611_v38  ;;  %1296 = vmatpush.msrb.mxu1 %v645_v39  ;;  %v589_v18 = vld [vmem:[%s1702_s28 + $0xc18] sm:$0xff]  ;;  %v623_v19 = vld [vmem:[%s1702_s28 + $0xd28] sm:$0xff] }
 0x10d   : > { %1317 = vmatpush.msrb.mxu2 %v675_v40  ;;  %1336 = vmatpush.msrb.mxu3 %v709_v41  ;;  %v653_v20 = vld [vmem:[%s1702_s28 + $0xe18] sm:$0xff]  ;;  %v687_v21 = vld [vmem:[%s1702_s28 + $0xf28] sm:$0xff] }
 0x10e   : > { %1278 = vmatpush.msrb.mxu0 %v609_v42  ;;  %1297 = vmatpush.msrb.mxu1 %v643_v43  ;;  %v587_v22 = vld [vmem:[%s1702_s28 + $0xc08] sm:$0xff]  ;;  %v621_v23 = vld [vmem:[%s1702_s28 + $0xd18] sm:$0xff] }
 0x10f   : > { %1318 = vmatpush.msrb.mxu2 %v673_v44  ;;  %1337 = vmatpush.msrb.mxu3 %v707_v45  ;;  %v651_v24 = vld [vmem:[%s1702_s28 + $0xe08] sm:$0xff]  ;;  %v685_v25 = vld [vmem:[%s1702_s28 + $0xf18] sm:$0xff]  ;;  %v831_v36 = vpop.f32.mrf.mxu1  ;;  %v811_v37 = vpop.f32.mrf.mxu0 }
 0x110   : > { %1279 = vmatpush.msrb.mxu0 %v607_v46  ;;  %1298 = vmatpush.msrb.mxu1 %v641_v47  ;;  %v619_v26 = vld [vmem:[%s1702_s28 + $0xd08] sm:$0xff]  ;;  %v1560_v31 = vld [vmem:[%s2351_s1 + $0x78] sm:$0xff] }
 0x111   : > { %1319 = vmatpush.msrb.mxu2 %v671_v48  ;;  %1338 = vmatpush.msrb.mxu3 %v705_v49  ;;  %v683_v27 = vld [vmem:[%s1702_s28 + $0xf08] sm:$0xff]  ;;  %v752_v49 = vadd.f32 %v751_v32, %v731_v33  ;;  %v1354_v32 = vld [vmem:[%s185_s4] sm:$0xff] }
 0x112   : > { %1280 = vmatpush.msrb.mxu0 %v605_v50  ;;  %1299 = vmatpush.msrb.mxu1 %v639_v51  ;;  %v1559_v30 = vld [vmem:[%s2351_s1 + $0x68] sm:$0xff]  ;;  %v851_v38 = vpop.f32.mrf.mxu2  ;;  %v871_v39 = vpop.f32.mrf.mxu3 }
 0x113   : > { %1320 = vmatpush.msrb.mxu2 %v669_v52  ;;  %1339 = vmatpush.msrb.mxu3 %v703_v53  ;;  %v772_v53 = vadd.f32 %v771_v34, %v752_v49 }
 0x114   : > { %1281 = vmatpush.msrb.mxu0 %v603_v54  ;;  %1300 = vmatpush.msrb.mxu1 %v637_v55 }
 0x115   : > { %1321 = vmatpush.msrb.mxu2 %v667_v56  ;;  %1340 = vmatpush.msrb.mxu3 %v701_v57  ;;  %v792_v56 = vadd.f32 %v791_v35, %v772_v53 }
 0x116   : > { %1282 = vmatpush.msrb.mxu0 %v601_v58  ;;  %1301 = vmatpush.msrb.mxu1 %v635_v59 }
 0x117   : > { %1322 = vmatpush.msrb.mxu2 %v665_v60  ;;  %1341 = vmatpush.msrb.mxu3 %v699_v61  ;;  %v911_v40 = vpop.f32.mrf.mxu1  ;;  %v891_v41 = vpop.f32.mrf.mxu0  ;;  %v812_v59 = vadd.f32 %v811_v37, %v792_v56 }
 0x118   : > { %1283 = vmatpush.msrb.mxu0 %v599_v62  ;;  %1302 = vmatpush.msrb.mxu1 %v633_v63 }
 0x119   : > { %1323 = vmatpush.msrb.mxu2 %v663_v0  ;;  %1342 = vmatpush.msrb.mxu3 %v697_v1  ;;  %v832_v62 = vadd.f32 %v831_v36, %v812_v59 }
 0x11a   : > { %1284 = vmatpush.msrb.mxu0 %v597_v2  ;;  %1303 = vmatpush.msrb.mxu1 %v631_v3  ;;  %v931_v42 = vpop.f32.mrf.mxu2  ;;  %v951_v43 = vpop.f32.mrf.mxu3 }
 0x11b   : > { %1324 = vmatpush.msrb.mxu2 %v661_v4  ;;  %1343 = vmatpush.msrb.mxu3 %v695_v5  ;;  %v852_v1 = vadd.f32 %v851_v38, %v832_v62 }
 0x11c   : > { %1285 = vmatpush.msrb.mxu0 %v595_v6  ;;  %1304 = vmatpush.msrb.mxu1 %v629_v7 }
 0x11d   : > { %1325 = vmatpush.msrb.mxu2 %v659_v8  ;;  %1344 = vmatpush.msrb.mxu3 %v693_v9  ;;  %v872_v4 = vadd.f32 %v871_v39, %v852_v1  ;;  %v1625_v39 = vmov 0  }
 0x11e   : > { %1286 = vmatpush.msrb.mxu0 %v593_v10  ;;  %1305 = vmatpush.msrb.mxu1 %v627_v11 }
 0x11f   : > { %1326 = vmatpush.msrb.mxu2 %v657_v12  ;;  %1345 = vmatpush.msrb.mxu3 %v691_v13  ;;  %v991_v44 = vpop.f32.mrf.mxu1  ;;  %v971_v45 = vpop.f32.mrf.mxu0  ;;  %v892_v7 = vadd.f32 %v891_v41, %v872_v4 }
 0x120   : > { %1287 = vmatpush.msrb.mxu0 %v591_v14  ;;  %1306 = vmatpush.msrb.mxu1 %v625_v15 }
 0x121   : > { %1327 = vmatpush.msrb.mxu2 %v655_v16  ;;  %1346 = vmatpush.msrb.mxu3 %v689_v17  ;;  %v912_v10 = vadd.f32 %v911_v40, %v892_v7 }
 0x122   : > { %1288 = vmatpush.msrb.mxu0 %v589_v18  ;;  %1307 = vmatpush.msrb.mxu1 %v623_v19  ;;  %v1011_v46 = vpop.f32.mrf.mxu2 }
 0x123   : > { %1328 = vmatpush.msrb.mxu2 %v653_v20  ;;  %1347 = vmatpush.msrb.mxu3 %v687_v21  ;;  %v932_v13 = vadd.f32 %v931_v42, %v912_v10 }
 0x124   : > { %1289 = vmatpush.msrb.mxu0 %v587_v22  ;;  %1308 = vmatpush.msrb.mxu1 %v621_v23  ;;  %v1031_v47 = vpop.f32.mrf.mxu3 }
 0x125   : > { %1329 = vmatpush.msrb.mxu2 %v651_v24  ;;  %1348 = vmatpush.msrb.mxu3 %v685_v25  ;;  %v952_v16 = vadd.f32 %v951_v43, %v932_v13 }
 0x126   : > { %1290 = vmatmul.f32.vlgmr.msrb.gmra.mxu0 %v1557_v28  ;;  %1330 = vmatmul.f32.vlgmr.msrb.gmra.mxu2 %v1558_v29 }
 0x127   : > { %1309 = vmatpush.msrb.mxu1 %v619_v26  ;;  %1349 = vmatpush.msrb.mxu3 %v683_v27  ;;  %v972_v18 = vadd.f32 %v971_v45, %v952_v16 }
 0x128   : > { %1310 = vmatmul.f32.vlgmr.msrb.gmra.mxu1 %v1559_v30  ;;  %1350 = vmatmul.f32.vlgmr.msrb.gmra.mxu3 %v1560_v31 }
 0x129   : > { %v992_v22 = vadd.f32 %v991_v44, %v972_v18  ;;  %1540 = vset.pattern.permute.xlu0 %v1625_v39 }
 0x12b   : > { %v1012_v24 = vadd.f32 %v1011_v46, %v992_v22 }
 0x12d   : > { %v1032_v29 = vadd.f32 %v1031_v47, %v1012_v24 }
 0x15d   : > { %v1051_v50 = vpop.f32.mrf.mxu0 }
 0x160   : > { %v1071_v48 = vpop.f32.mrf.mxu1 }
 0x161   : > { %v1072_v51 = vadd.f32 %v1071_v48, %v1051_v50  ;;  %v1091_v52 = vpop.f32.mrf.mxu2 }
 0x163   : > { %v1092_v54 = vadd.f32 %v1091_v52, %v1072_v51 }
 0x164   : > { %v1111_v55 = vpop.f32.mrf.mxu3 }
 0x165   : > { %v1112_v57 = vadd.f32 %v1111_v55, %v1092_v54 }
 0x167   : > { %v1131_v58 = vpop.f32.mrf.mxu0 }
 0x168   : > { %v1132_v60 = vadd.f32 %v1131_v58, %v1112_v57 }
 0x16a   : > { %v1151_v61 = vpop.f32.mrf.mxu1 }
 0x16b   : > { %v1152_v63 = vadd.f32 %v1151_v61, %v1132_v60  ;;  %v1171_v0 = vpop.f32.mrf.mxu2 }
 0x16d   : > { %v1172_v2 = vadd.f32 %v1171_v0, %v1152_v63 }
 0x16e   : > { %v1191_v3 = vpop.f32.mrf.mxu3 }
 0x16f   : > { %v1192_v6 = vadd.f32 %v1191_v3, %v1172_v2 }
 0x181   : > { %v1211_v5 = vpop.f32.mrf.mxu0 }
 0x182   : > { %v1212_v8 = vadd.f32 %v1211_v5, %v1192_v6 }
 0x184   : > { %v1231_v9 = vpop.f32.mrf.mxu1 }
 0x185   : > { %v1232_v12 = vadd.f32 %v1231_v9, %v1212_v8 }
 0x187   : > { %v1251_v11 = vpop.f32.mrf.mxu2 }
 0x188   : > { %v1252_v14 = vadd.f32 %v1251_v11, %v1232_v12 }
 0x18a   : > { %v1271_v15 = vpop.f32.mrf.mxu3 }
 0x18b   : > { %v1272_v17 = vadd.f32 %v1271_v15, %v1252_v14 }
 0x1a3   : > { %v1291_v19 = vpop.f32.mrf.mxu0 }
 0x1a4   : > { %v1292_v20 = vadd.f32 %v1291_v19, %v1272_v17 }
 0x1a5   : > { %v1311_v21 = vpop.f32.mrf.mxu1 }
 0x1a6   : > { %v1312_v23 = vadd.f32 %v1311_v21, %v1292_v20 }
 0x1a9   : > { %v1331_v25 = vpop.f32.mrf.mxu2 }
 0x1aa   : > { %v1332_v26 = vadd.f32 %v1331_v25, %v1312_v23 }
 0x1ab   : > { %v1351_v27 = vpop.f32.mrf.mxu3 }
 0x1ac   : > { %v1352_v28 = vadd.f32 %v1351_v27, %v1332_v26 }
 0x1ae   : > { %v1356_v30 = vsel %vm1355_vm0, %v1352_v28, 0.0 }
 0x1af   : > { %v1357_v31 = vadd.f32 %v1356_v30, %v1032_v29 }
 0x1b1   : > { %1358 = vadd.xlane.f32.xlu0 %v1357_v31 }
 0x224   : > { %v1359_v33 = vpop.xlane.xlu0 %1358 }
 0x225   : > { %v1360_v34 = vadd.f32 %v1359_v33, %v1354_v32 }
 0x227   : > { %v1362_v35 = vsel %vm1361_vm1, %v1360_v34, -inf }
 0x228   : > { %v1363_v36 = vrot.slane %v1362_v35, 4 }
 0x22a   : > { %v1364_v37 = vmax.f32 %v1362_v35, %v1363_v36 }
 0x22c   : > { %v1365_v38 = vrot.slane %v1364_v37, 2 }
 0x22e   : > { %v1366_v40 = vmax.f32 %v1364_v37, %v1365_v38 }
 0x230   : > { %v1367_v41 = vrot.slane %v1366_v40, 1 }
 0x232   : > { %v1368_v42 = vmax.f32 %v1366_v40, %v1367_v41 }
 0x234   : > { %v1369_v43 = vsub.f32 %v1360_v34, %v1368_v42 }
 0x236   : > { %v1370_v44 = vmul.f32 1.442695, %v1369_v43 }
 0x238   : > { %1541 = vpow2.f32 %v1370_v44 }
 0x23e   : > { %v1542_v45 = vpop.eup %1541 }
 0x23f   : > { %v1372_v46 = vsel %vm1361_vm1, %v1542_v45, 0.0 }
 0x240   : > { %v1373_v47 = vrot.slane %v1372_v46, 4 }
 0x242   : > { %v1374_v48 = vadd.f32 %v1373_v47, %v1372_v46 }
 0x244   : > { %v1375_v49 = vrot.slane %v1374_v48, 2 }
 0x246   : > { %v1376_v50 = vadd.f32 %v1375_v49, %v1374_v48 }
 0x248   : > { %v1377_v51 = vrot.slane %v1376_v50, 1 }
 0x24a   : > { %v1378_v52 = vadd.f32 %v1377_v51, %v1376_v50 }
 0x24c   : > { %1543 = vrcp.f32 %v1378_v52  ;;  %v1390_v56 = vand.u32 2147483648, %v1378_v52  ;;  %v1388_v58 = vand.u32 2147483647, %v1378_v52  ;;  %vm1384_vm3 = vweird.f32 %v1378_v52 }
 0x24e   : > { %v1391_v60 = vor.u32 1.1754944e-38, %v1390_v56  ;;  %vm1389_vm5 = vcmp.eq.f32.partialorder %v1388_v58, 8.507059e+37 }
 0x252   : > { %v1544_v53 = vpop.eup %1543 }
 0x253   : > { %v1380_v54 = vmul.f32 %v1544_v53, %v1378_v52  ;;  %vm1385_vm2 = vweird.f32 %v1544_v53 }
 0x254   : > { %vm1386_vm4 = vmor %vm1384_vm3, %vm1385_vm2 }
 0x255   : > { %v1381_v55 = vsub.f32 1.0, %v1380_v54 }
 0x257   : > { %v1382_v57 = vmul.f32 %v1544_v53, %v1381_v55 }
 0x259   : > { %v1383_v59 = vadd.f32 %v1544_v53, %v1382_v57 }
 0x25b   : > { %v1387_v61 = vsel %vm1386_vm4, %v1544_v53, %v1383_v59 }
 0x25c   : > { %v1392_v62 = vsel %vm1389_vm5, %v1391_v60, %v1387_v61 }
 0x25d   : > { %v1393_v63 = vmul.f32 %v1542_v45, %v1392_v62 }
 0x25f   : > { %1396 = vperm.xlu0 %1540, %v1393_v63  }
 0x2d1   : > { %v1397_v0 = vpop.permute.xlu0 %1396 }
 0x2d2   : > { %1399 = vst [vmem:[%s176_s10] sm:$0xff] %v1397_v0 }
 0x2d3   : > { %1588 = shalt.err (!%p1585_p3)
}
 0x2d4   : > { %1500 = dma.vmem_to_hbm [thread:$0]  (%p1684_p5), %s1414_s11, 128, %s1416_s17, %s1401_s19  }
 0x2d5 PF: > { %p1506_p4 = scmp.ge.s32.totalorder %s1623_s15, 2  ;;  %s1427_s30 = sand.u32 1, %s1611_s12  }
 0x2d6   : > { %s1428_s4 = scalar_lea.sflag [#allocation3], %s1427_s30 }
 0x2d7   : > { %p1503_p7 = pnand %p1506_p4, %p1688_p6 }
 0x2d9   : > { %p1504_p8 = pneg %p1503_p7 }
 0x2db   : > { %1606 = dma.done.wait (%p1504_p8), %s1428_s4, 128  }
 0x2dc   : > { %1608 = vsyncadd (%p1504_p8), %s1428_s4, 4294967168  ;;  %p13_p9 = scmp.ge.s32.totalorder %s1671_s18, 4   ;;  %s2356_s12 = smov %s1615_s13 }
 0x2dd   : > { %s2357_s13 = smov %s1619_s14  ;;  %s2358_s14 = smov %s1682_s21 }
 0x2de   : > { %s2359_s15 = smov %s1671_s18  ;;  %15 = sbr.rel (!%p13_p9) target bundleno = 3 (0x3), region = 70 }
 0x2e3   :  { %1434 = vsyncpa [#allocation3], 1 }
 0x2e4   :  { %1436 = vsyncpa [#allocation3 + $0x1], 1 }

</bundles_post_ra>
